<compile_context>
chip_gen: v7x
topology: tpu7x:2x2x1
jax: 0.10.0
libtpu: 0.0.40
codegen_flags: <defaults>
</compile_context>

<pallas_src>
import functools

import jax
import jax.numpy as jnp
import numpy as np
from jax.experimental import pallas as pl
from jax.experimental.pallas import tpu as pltpu


# ----------------------------- fused Pallas kernel -------------------------- #

def _make_fused_kernel(num_layers, T, B, H):
    """Builds the fused LSTM-stack + FC kernel for static (num_layers, T, B, H).

    Ref layout (inputs, then output, then scratch):
      xw0_ref   : (T*B, 4H)  precomputed layer-0 input projection (bias folded in)
      whh0_ref  : (H, 4H)    layer-0 recurrent weights (transposed)
      for each layer l in 1..num_layers-1:
        wih_ref : (H, 4H), whh_ref : (H, 4H), b_ref : (1, 4H)
      fcw_ref   : (H, 1), fcb_ref : (1, 1)
      o_ref     : (B, 1)     output
      hseq_scr  : (T*B, H)   VMEM scratch holding an intermediate layer's sequence
    """
    GH = 4 * H

    def kernel(*refs):
        xw0_ref = refs[0]
        whh0_ref = refs[1]
        p = 2
        upper = []
        for _ in range(num_layers - 1):
            upper.append((refs[p], refs[p + 1], refs[p + 2]))
            p += 3
        fcw_ref = refs[p]
        fcb_ref = refs[p + 1]
        o_ref = refs[p + 2]
        hseq_scr = refs[p + 3]

        def run_layer(xw, whh, store_seq):
            # xw : (T*B, 4H) value (input projection, bias already included)
            # whh: (H, 4H)   value (recurrent weights, loaded once)
            h = jnp.zeros((B, H), jnp.float32)
            c = jnp.zeros((B, H), jnp.float32)
            for t in range(T):                      # static unrolled time loop
                gates = xw[t * B:(t + 1) * B, :] + jnp.dot(
                    h, whh, preferred_element_type=jnp.float32)   # (B, 4H)
                # Full-width nonlinearities: 1 sigmoid + 1 tanh over all 4H lanes.
                sig = jax.nn.sigmoid(gates)
                tnh = jnp.tanh(gates)
                i_g = sig[:, 0 * H:1 * H]
                f_g = sig[:, 1 * H:2 * H]
                g_g = tnh[:, 2 * H:3 * H]
                o_g = sig[:, 3 * H:4 * H]
                c = f_g * c + i_g * g_g
                h = o_g * jnp.tanh(c)
                if store_seq:
                    hseq_scr[t * B:(t + 1) * B, :] = h
            return h

        # ---- layer 0 (input projection was precomputed in the wrapper) ----
        h_last = run_layer(xw0_ref[...], whh0_ref[...],
                           store_seq=(num_layers > 1))

        # ---- layers 1 .. num_layers-1 ----
        for idx, (wih_ref, whh_ref, b_ref) in enumerate(upper):
            is_last = idx == (num_layers - 2)
            # Hoisted batched input projection for this layer: one matmul over
            # the whole sequence held in VMEM scratch.
            xw = jnp.dot(hseq_scr[...], wih_ref[...],
                         preferred_element_type=jnp.float32) + b_ref[...]
            h_last = run_layer(xw, whh_ref[...], store_seq=not is_last)

        # ---- fused FC head on the last hidden state ----
        o_ref[...] = (jnp.dot(h_last, fcw_ref[...],
                              preferred_element_type=jnp.float32) + fcb_ref[...])

    return kernel


# ------------------------------ params & wrapper ---------------------------- #

def init_params(key, input_size, hidden_size, num_layers):
    """Deterministic init mimicking PyTorch's U(-1/sqrt(H), 1/sqrt(H)), raw layout."""
    bound = 1.0 / np.sqrt(hidden_size)
    lstm_params = []
    for layer in range(num_layers):
        din = input_size if layer == 0 else hidden_size
        key, k1, k2, k3, k4 = jax.random.split(key, 5)
        w_ih = jax.random.uniform(k1, (4 * hidden_size, din), jnp.float32, -bound, bound)
        w_hh = jax.random.uniform(k2, (4 * hidden_size, hidden_size), jnp.float32, -bound, bound)
        b_ih = jax.random.uniform(k3, (4 * hidden_size,), jnp.float32, -bound, bound)
        b_hh = jax.random.uniform(k4, (4 * hidden_size,), jnp.float32, -bound, bound)
        lstm_params.append((w_ih, w_hh, b_ih, b_hh))
    key, k5, k6 = jax.random.split(key, 3)
    fc_w = jax.random.uniform(k5, (1, hidden_size), jnp.float32, -bound, bound)
    fc_b = jax.random.uniform(k6, (1,), jnp.float32, -bound, bound)
    return lstm_params, (fc_w, fc_b)


def preprocess_params(lstm_params, fc_params):
    """One-time pre-transpose / bias-combine so the forward pass does no layout ops."""
    layers = []
    for (w_ih, w_hh, b_ih, b_hh) in lstm_params:
        layers.append(dict(
            wih_t=jnp.transpose(w_ih).astype(jnp.float32),        # (Din, 4H)
            whh_t=jnp.transpose(w_hh).astype(jnp.float32),        # (H, 4H)
            b=(b_ih + b_hh).reshape(1, -1).astype(jnp.float32),   # (1, 4H)
        ))
    fc_w, fc_b = fc_params
    fc = dict(w_t=jnp.transpose(fc_w).astype(jnp.float32),        # (H, 1)
              b=fc_b.reshape(1, 1).astype(jnp.float32))           # (1, 1)
    return layers, fc


@jax.jit
def stock_predictor_forward(x, layers, fc):
    """x: (B, T, input_size) batch_first, like the PyTorch module. Returns (B, 1)."""
    B, T, Din = x.shape
    H = layers[0]["whh_t"].shape[0]
    num_layers = len(layers)

    # Time-major flatten so row t*B+b is (time t, batch b); hoisted layer-0
    # input projection (single matmul, bias folded in) outside the recurrence.
    x2d = jnp.transpose(x.astype(jnp.float32), (1, 0, 2)).reshape(T * B, Din)
    xw0 = jnp.dot(x2d, layers[0]["wih_t"],
                  preferred_element_type=jnp.float32) + layers[0]["b"]   # (T*B, 4H)

    args = [xw0, layers[0]["whh_t"]]
    for lyr in layers[1:]:
        args += [lyr["wih_t"], lyr["whh_t"], lyr["b"]]
    args += [fc["w_t"], fc["b"]]

    kernel = _make_fused_kernel(num_layers, T, B, H)
    return pl.pallas_call(
        kernel,
        out_shape=jax.ShapeDtypeStruct((B, 1), jnp.float32),
        in_specs=[pl.BlockSpec(memory_space=pltpu.MemorySpace.VMEM)] * len(args),
        out_specs=pl.BlockSpec(memory_space=pltpu.MemorySpace.VMEM),
        scratch_shapes=[pltpu.VMEM((T * B, H), jnp.float32)],
    )(*args)


# ------------------------- pure-JAX reference ------------------------------ #

def reference_forward(x, lstm_params, fc_params):
    B, T, _ = x.shape
    inp = x.astype(jnp.float32)
    for (w_ih, w_hh, b_ih, b_hh) in lstm_params:
        H = w_hh.shape[1]
        h = jnp.zeros((B, H), jnp.float32)
        c = jnp.zeros((B, H), jnp.float32)
        outs = []
        for t in range(T):
            gates = inp[:, t, :] @ w_ih.T + h @ w_hh.T + b_ih + b_hh
            i = jax.nn.sigmoid(gates[:, :H])
            f = jax.nn.sigmoid(gates[:, H:2 * H])
            g = jnp.tanh(gates[:, 2 * H:3 * H])
            o = jax.nn.sigmoid(gates[:, 3 * H:])
            c = f * c + i * g
            h = o * jnp.tanh(c)
            outs.append(h)
        inp = jnp.stack(outs, axis=1)
    fc_w, fc_b = fc_params
    return inp[:, -1, :] @ fc_w.T + fc_b


# --------------------------------- main ------------------------------------ #

if __name__ == "__main__":
    B, T, INPUT_SIZE, HIDDEN_SIZE, NUM_LAYERS = 2, 8, 4, 32, 2

    key = jax.random.PRNGKey(0)
    key, kx = jax.random.split(key)
    x = jax.random.normal(kx, (B, T, INPUT_SIZE), jnp.float32)

    lstm_params, fc_params = init_params(key, INPUT_SIZE, HIDDEN_SIZE, NUM_LAYERS)
    layers, fc = preprocess_params(lstm_params, fc_params)

    out = jax.block_until_ready(stock_predictor_forward(x, layers, fc))
    ref = jax.block_until_ready(reference_forward(x, lstm_params, fc_params))

    assert out.shape == (B, 1), out.shape
    np.testing.assert_allclose(np.asarray(out), np.asarray(ref), rtol=1e-4, atol=1e-4)

    print("KERNEL_OK")
</pallas_src>

<mosaic_0001>
module attributes {stable_mosaic.version = 11 : i64} {
  func.func @kernel(%arg0: memref<16x128xf32, #tpu.memory_space<vmem>>, %arg1: memref<32x128xf32, #tpu.memory_space<vmem>>, %arg2: memref<32x128xf32, #tpu.memory_space<vmem>>, %arg3: memref<32x128xf32, #tpu.memory_space<vmem>>, %arg4: memref<1x128xf32, #tpu.memory_space<vmem>>, %arg5: memref<32x1xf32, #tpu.memory_space<vmem>>, %arg6: memref<1x1xf32, #tpu.memory_space<vmem>>, %arg7: memref<2x1xf32, #tpu.memory_space<vmem>>, %arg8: memref<16x32xf32, #tpu.memory_space<vmem>>) attributes {dimension_semantics = [], scalar_prefetch = 0 : i64, scratch_operands = 1 : i64, tpu.core_type = #tpu.core_type<tc>} {
    %c0 = arith.constant 0 : index
    %c0_0 = arith.constant 0 : index
    %0 = vector.load %arg0[%c0, %c0_0] : memref<16x128xf32, #tpu.memory_space<vmem>>, vector<16x128xf32>
    %c0_1 = arith.constant 0 : index
    %c0_2 = arith.constant 0 : index
    %1 = vector.load %arg1[%c0_1, %c0_2] : memref<32x128xf32, #tpu.memory_space<vmem>>, vector<32x128xf32>
    %cst = arith.constant 0.000000e+00 : f32
    %2 = vector.broadcast %cst : f32 to vector<2x32xf32>
    %cst_3 = arith.constant 0.000000e+00 : f32
    %3 = vector.broadcast %cst_3 : f32 to vector<2x32xf32>
    %4 = vector.extract_strided_slice %0 {offsets = [0, 0], sizes = [2, 128], strides = [1, 1]} : vector<16x128xf32> to vector<2x128xf32>
    %cst_4 = arith.constant dense<0.000000e+00> : vector<2x128xf32>
    %5 = tpu.matmul %2, %1, %cst_4 {dimension_numbers = #tpu.dot_dimension_numbers<[1], [0], [0], [1], [0, 0, 1, 1], [], []>} : vector<2x32xf32>, vector<32x128xf32>, vector<2x128xf32> -> vector<2x128xf32>
    %6 = arith.addf %4, %5 : vector<2x128xf32>
    %7 = arith.negf %6 : vector<2x128xf32>
    %8 = math.exp %7 : vector<2x128xf32>
    %cst_5 = arith.constant 1.000000e+00 : f32
    %9 = vector.broadcast %cst_5 : f32 to vector<2x128xf32>
    %10 = arith.addf %9, %8 : vector<2x128xf32>
    %11 = arith.divf %9, %10 : vector<2x128xf32>
    %12 = math.tanh %6 : vector<2x128xf32>
    %13 = vector.extract_strided_slice %11 {offsets = [0, 0], sizes = [2, 32], strides = [1, 1]} : vector<2x128xf32> to vector<2x32xf32>
    %14 = vector.extract_strided_slice %11 {offsets = [0, 32], sizes = [2, 32], strides = [1, 1]} : vector<2x128xf32> to vector<2x32xf32>
    %15 = vector.extract_strided_slice %12 {offsets = [0, 64], sizes = [2, 32], strides = [1, 1]} : vector<2x128xf32> to vector<2x32xf32>
    %16 = vector.extract_strided_slice %11 {offsets = [0, 96], sizes = [2, 32], strides = [1, 1]} : vector<2x128xf32> to vector<2x32xf32>
    %17 = arith.mulf %14, %3 : vector<2x32xf32>
    %18 = arith.mulf %13, %15 : vector<2x32xf32>
    %19 = arith.addf %17, %18 : vector<2x32xf32>
    %20 = math.tanh %19 : vector<2x32xf32>
    %21 = arith.mulf %16, %20 : vector<2x32xf32>
    %c0_6 = arith.constant 0 : index
    %c0_7 = arith.constant 0 : index
    %22 = vector.load %arg8[%c0_6, %c0_7] : memref<16x32xf32, #tpu.memory_space<vmem>>, vector<2x32xf32>
    tpu.vector_store %arg8[%c0_6, %c0_7], %21 {strides = array<i32>} : memref<16x32xf32, #tpu.memory_space<vmem>>, vector<2x32xf32>,
    %23 = vector.extract_strided_slice %0 {offsets = [2, 0], sizes = [2, 128], strides = [1, 1]} : vector<16x128xf32> to vector<2x128xf32>
    %cst_8 = arith.constant dense<0.000000e+00> : vector<2x128xf32>
    %24 = tpu.matmul %21, %1, %cst_8 {dimension_numbers = #tpu.dot_dimension_numbers<[1], [0], [0], [1], [0, 0, 1, 1], [], []>} : vector<2x32xf32>, vector<32x128xf32>, vector<2x128xf32> -> vector<2x128xf32>
    %25 = arith.addf %23, %24 : vector<2x128xf32>
    %26 = arith.negf %25 : vector<2x128xf32>
    %27 = math.exp %26 : vector<2x128xf32>
    %cst_9 = arith.constant 1.000000e+00 : f32
    %28 = vector.broadcast %cst_9 : f32 to vector<2x128xf32>
    %29 = arith.addf %28, %27 : vector<2x128xf32>
    %30 = arith.divf %28, %29 : vector<2x128xf32>
    %31 = math.tanh %25 : vector<2x128xf32>
    %32 = vector.extract_strided_slice %30 {offsets = [0, 0], sizes = [2, 32], strides = [1, 1]} : vector<2x128xf32> to vector<2x32xf32>
    %33 = vector.extract_strided_slice %30 {offsets = [0, 32], sizes = [2, 32], strides = [1, 1]} : vector<2x128xf32> to vector<2x32xf32>
    %34 = vector.extract_strided_slice %31 {offsets = [0, 64], sizes = [2, 32], strides = [1, 1]} : vector<2x128xf32> to vector<2x32xf32>
    %35 = vector.extract_strided_slice %30 {offsets = [0, 96], sizes = [2, 32], strides = [1, 1]} : vector<2x128xf32> to vector<2x32xf32>
    %36 = arith.mulf %33, %19 : vector<2x32xf32>
    %37 = arith.mulf %32, %34 : vector<2x32xf32>
    %38 = arith.addf %36, %37 : vector<2x32xf32>
    %39 = math.tanh %38 : vector<2x32xf32>
    %40 = arith.mulf %35, %39 : vector<2x32xf32>
    %c2 = arith.constant 2 : index
    %c0_10 = arith.constant 0 : index
    %41 = vector.load %arg8[%c2, %c0_10] : memref<16x32xf32, #tpu.memory_space<vmem>>, vector<2x32xf32>
    tpu.vector_store %arg8[%c2, %c0_10], %40 {strides = array<i32>} : memref<16x32xf32, #tpu.memory_space<vmem>>, vector<2x32xf32>,
    %42 = vector.extract_strided_slice %0 {offsets = [4, 0], sizes = [2, 128], strides = [1, 1]} : vector<16x128xf32> to vector<2x128xf32>
    %cst_11 = arith.constant dense<0.000000e+00> : vector<2x128xf32>
    %43 = tpu.matmul %40, %1, %cst_11 {dimension_numbers = #tpu.dot_dimension_numbers<[1], [0], [0], [1], [0, 0, 1, 1], [], []>} : vector<2x32xf32>, vector<32x128xf32>, vector<2x128xf32> -> vector<2x128xf32>
    %44 = arith.addf %42, %43 : vector<2x128xf32>
    %45 = arith.negf %44 : vector<2x128xf32>
    %46 = math.exp %45 : vector<2x128xf32>
    %cst_12 = arith.constant 1.000000e+00 : f32
    %47 = vector.broadcast %cst_12 : f32 to vector<2x128xf32>
    %48 = arith.addf %47, %46 : vector<2x128xf32>
    %49 = arith.divf %47, %48 : vector<2x128xf32>
    %50 = math.tanh %44 : vector<2x128xf32>
    %51 = vector.extract_strided_slice %49 {offsets = [0, 0], sizes = [2, 32], strides = [1, 1]} : vector<2x128xf32> to vector<2x32xf32>
    %52 = vector.extract_strided_slice %49 {offsets = [0, 32], sizes = [2, 32], strides = [1, 1]} : vector<2x128xf32> to vector<2x32xf32>
    %53 = vector.extract_strided_slice %50 {offsets = [0, 64], sizes = [2, 32], strides = [1, 1]} : vector<2x128xf32> to vector<2x32xf32>
    %54 = vector.extract_strided_slice %49 {offsets = [0, 96], sizes = [2, 32], strides = [1, 1]} : vector<2x128xf32> to vector<2x32xf32>
    %55 = arith.mulf %52, %38 : vector<2x32xf32>
    %56 = arith.mulf %51, %53 : vector<2x32xf32>
    %57 = arith.addf %55, %56 : vector<2x32xf32>
    %58 = math.tanh %57 : vector<2x32xf32>
    %59 = arith.mulf %54, %58 : vector<2x32xf32>
    %c4 = arith.constant 4 : index
    %c0_13 = arith.constant 0 : index
    %60 = vector.load %arg8[%c4, %c0_13] : memref<16x32xf32, #tpu.memory_space<vmem>>, vector<2x32xf32>
    tpu.vector_store %arg8[%c4, %c0_13], %59 {strides = array<i32>} : memref<16x32xf32, #tpu.memory_space<vmem>>, vector<2x32xf32>,
    %61 = vector.extract_strided_slice %0 {offsets = [6, 0], sizes = [2, 128], strides = [1, 1]} : vector<16x128xf32> to vector<2x128xf32>
    %cst_14 = arith.constant dense<0.000000e+00> : vector<2x128xf32>
    %62 = tpu.matmul %59, %1, %cst_14 {dimension_numbers = #tpu.dot_dimension_numbers<[1], [0], [0], [1], [0, 0, 1, 1], [], []>} : vector<2x32xf32>, vector<32x128xf32>, vector<2x128xf32> -> vector<2x128xf32>
    %63 = arith.addf %61, %62 : vector<2x128xf32>
    %64 = arith.negf %63 : vector<2x128xf32>
    %65 = math.exp %64 : vector<2x128xf32>
    %cst_15 = arith.constant 1.000000e+00 : f32
    %66 = vector.broadcast %cst_15 : f32 to vector<2x128xf32>
    %67 = arith.addf %66, %65 : vector<2x128xf32>
    %68 = arith.divf %66, %67 : vector<2x128xf32>
    %69 = math.tanh %63 : vector<2x128xf32>
    %70 = vector.extract_strided_slice %68 {offsets = [0, 0], sizes = [2, 32], strides = [1, 1]} : vector<2x128xf32> to vector<2x32xf32>
    %71 = vector.extract_strided_slice %68 {offsets = [0, 32], sizes = [2, 32], strides = [1, 1]} : vector<2x128xf32> to vector<2x32xf32>
    %72 = vector.extract_strided_slice %69 {offsets = [0, 64], sizes = [2, 32], strides = [1, 1]} : vector<2x128xf32> to vector<2x32xf32>
    %73 = vector.extract_strided_slice %68 {offsets = [0, 96], sizes = [2, 32], strides = [1, 1]} : vector<2x128xf32> to vector<2x32xf32>
    %74 = arith.mulf %71, %57 : vector<2x32xf32>
    %75 = arith.mulf %70, %72 : vector<2x32xf32>
    %76 = arith.addf %74, %75 : vector<2x32xf32>
    %77 = math.tanh %76 : vector<2x32xf32>
    %78 = arith.mulf %73, %77 : vector<2x32xf32>
    %c6 = arith.constant 6 : index
    %c0_16 = arith.constant 0 : index
    %79 = vector.load %arg8[%c6, %c0_16] : memref<16x32xf32, #tpu.memory_space<vmem>>, vector<2x32xf32>
    tpu.vector_store %arg8[%c6, %c0_16], %78 {strides = array<i32>} : memref<16x32xf32, #tpu.memory_space<vmem>>, vector<2x32xf32>,
    %80 = vector.extract_strided_slice %0 {offsets = [8, 0], sizes = [2, 128], strides = [1, 1]} : vector<16x128xf32> to vector<2x128xf32>
    %cst_17 = arith.constant dense<0.000000e+00> : vector<2x128xf32>
    %81 = tpu.matmul %78, %1, %cst_17 {dimension_numbers = #tpu.dot_dimension_numbers<[1], [0], [0], [1], [0, 0, 1, 1], [], []>} : vector<2x32xf32>, vector<32x128xf32>, vector<2x128xf32> -> vector<2x128xf32>
    %82 = arith.addf %80, %81 : vector<2x128xf32>
    %83 = arith.negf %82 : vector<2x128xf32>
    %84 = math.exp %83 : vector<2x128xf32>
    %cst_18 = arith.constant 1.000000e+00 : f32
    %85 = vector.broadcast %cst_18 : f32 to vector<2x128xf32>
    %86 = arith.addf %85, %84 : vector<2x128xf32>
    %87 = arith.divf %85, %86 : vector<2x128xf32>
    %88 = math.tanh %82 : vector<2x128xf32>
    %89 = vector.extract_strided_slice %87 {offsets = [0, 0], sizes = [2, 32], strides = [1, 1]} : vector<2x128xf32> to vector<2x32xf32>
    %90 = vector.extract_strided_slice %87 {offsets = [0, 32], sizes = [2, 32], strides = [1, 1]} : vector<2x128xf32> to vector<2x32xf32>
    %91 = vector.extract_strided_slice %88 {offsets = [0, 64], sizes = [2, 32], strides = [1, 1]} : vector<2x128xf32> to vector<2x32xf32>
    %92 = vector.extract_strided_slice %87 {offsets = [0, 96], sizes = [2, 32], strides = [1, 1]} : vector<2x128xf32> to vector<2x32xf32>
    %93 = arith.mulf %90, %76 : vector<2x32xf32>
    %94 = arith.mulf %89, %91 : vector<2x32xf32>
    %95 = arith.addf %93, %94 : vector<2x32xf32>
    %96 = math.tanh %95 : vector<2x32xf32>
    %97 = arith.mulf %92, %96 : vector<2x32xf32>
    %c8 = arith.constant 8 : index
    %c0_19 = arith.constant 0 : index
    %98 = vector.load %arg8[%c8, %c0_19] : memref<16x32xf32, #tpu.memory_space<vmem>>, vector<2x32xf32>
    tpu.vector_store %arg8[%c8, %c0_19], %97 {strides = array<i32>} : memref<16x32xf32, #tpu.memory_space<vmem>>, vector<2x32xf32>,
    %99 = vector.extract_strided_slice %0 {offsets = [10, 0], sizes = [2, 128], strides = [1, 1]} : vector<16x128xf32> to vector<2x128xf32>
    %cst_20 = arith.constant dense<0.000000e+00> : vector<2x128xf32>
    %100 = tpu.matmul %97, %1, %cst_20 {dimension_numbers = #tpu.dot_dimension_numbers<[1], [0], [0], [1], [0, 0, 1, 1], [], []>} : vector<2x32xf32>, vector<32x128xf32>, vector<2x128xf32> -> vector<2x128xf32>
    %101 = arith.addf %99, %100 : vector<2x128xf32>
    %102 = arith.negf %101 : vector<2x128xf32>
    %103 = math.exp %102 : vector<2x128xf32>
    %cst_21 = arith.constant 1.000000e+00 : f32
    %104 = vector.broadcast %cst_21 : f32 to vector<2x128xf32>
    %105 = arith.addf %104, %103 : vector<2x128xf32>
    %106 = arith.divf %104, %105 : vector<2x128xf32>
    %107 = math.tanh %101 : vector<2x128xf32>
    %108 = vector.extract_strided_slice %106 {offsets = [0, 0], sizes = [2, 32], strides = [1, 1]} : vector<2x128xf32> to vector<2x32xf32>
    %109 = vector.extract_strided_slice %106 {offsets = [0, 32], sizes = [2, 32], strides = [1, 1]} : vector<2x128xf32> to vector<2x32xf32>
    %110 = vector.extract_strided_slice %107 {offsets = [0, 64], sizes = [2, 32], strides = [1, 1]} : vector<2x128xf32> to vector<2x32xf32>
    %111 = vector.extract_strided_slice %106 {offsets = [0, 96], sizes = [2, 32], strides = [1, 1]} : vector<2x128xf32> to vector<2x32xf32>
    %112 = arith.mulf %109, %95 : vector<2x32xf32>
    %113 = arith.mulf %108, %110 : vector<2x32xf32>
    %114 = arith.addf %112, %113 : vector<2x32xf32>
    %115 = math.tanh %114 : vector<2x32xf32>
    %116 = arith.mulf %111, %115 : vector<2x32xf32>
    %c10 = arith.constant 10 : index
    %c0_22 = arith.constant 0 : index
    %117 = vector.load %arg8[%c10, %c0_22] : memref<16x32xf32, #tpu.memory_space<vmem>>, vector<2x32xf32>
    tpu.vector_store %arg8[%c10, %c0_22], %116 {strides = array<i32>} : memref<16x32xf32, #tpu.memory_space<vmem>>, vector<2x32xf32>,
    %118 = vector.extract_strided_slice %0 {offsets = [12, 0], sizes = [2, 128], strides = [1, 1]} : vector<16x128xf32> to vector<2x128xf32>
    %cst_23 = arith.constant dense<0.000000e+00> : vector<2x128xf32>
    %119 = tpu.matmul %116, %1, %cst_23 {dimension_numbers = #tpu.dot_dimension_numbers<[1], [0], [0], [1], [0, 0, 1, 1], [], []>} : vector<2x32xf32>, vector<32x128xf32>, vector<2x128xf32> -> vector<2x128xf32>
    %120 = arith.addf %118, %119 : vector<2x128xf32>
    %121 = arith.negf %120 : vector<2x128xf32>
    %122 = math.exp %121 : vector<2x128xf32>
    %cst_24 = arith.constant 1.000000e+00 : f32
    %123 = vector.broadcast %cst_24 : f32 to vector<2x128xf32>
    %124 = arith.addf %123, %122 : vector<2x128xf32>
    %125 = arith.divf %123, %124 : vector<2x128xf32>
    %126 = math.tanh %120 : vector<2x128xf32>
    %127 = vector.extract_strided_slice %125 {offsets = [0, 0], sizes = [2, 32], strides = [1, 1]} : vector<2x128xf32> to vector<2x32xf32>
    %128 = vector.extract_strided_slice %125 {offsets = [0, 32], sizes = [2, 32], strides = [1, 1]} : vector<2x128xf32> to vector<2x32xf32>
    %129 = vector.extract_strided_slice %126 {offsets = [0, 64], sizes = [2, 32], strides = [1, 1]} : vector<2x128xf32> to vector<2x32xf32>
    %130 = vector.extract_strided_slice %125 {offsets = [0, 96], sizes = [2, 32], strides = [1, 1]} : vector<2x128xf32> to vector<2x32xf32>
    %131 = arith.mulf %128, %114 : vector<2x32xf32>
    %132 = arith.mulf %127, %129 : vector<2x32xf32>
    %133 = arith.addf %131, %132 : vector<2x32xf32>
    %134 = math.tanh %133 : vector<2x32xf32>
    %135 = arith.mulf %130, %134 : vector<2x32xf32>
    %c12 = arith.constant 12 : index
    %c0_25 = arith.constant 0 : index
    %136 = vector.load %arg8[%c12, %c0_25] : memref<16x32xf32, #tpu.memory_space<vmem>>, vector<2x32xf32>
    tpu.vector_store %arg8[%c12, %c0_25], %135 {strides = array<i32>} : memref<16x32xf32, #tpu.memory_space<vmem>>, vector<2x32xf32>,
    %137 = vector.extract_strided_slice %0 {offsets = [14, 0], sizes = [2, 128], strides = [1, 1]} : vector<16x128xf32> to vector<2x128xf32>
    %cst_26 = arith.constant dense<0.000000e+00> : vector<2x128xf32>
    %138 = tpu.matmul %135, %1, %cst_26 {dimension_numbers = #tpu.dot_dimension_numbers<[1], [0], [0], [1], [0, 0, 1, 1], [], []>} : vector<2x32xf32>, vector<32x128xf32>, vector<2x128xf32> -> vector<2x128xf32>
    %139 = arith.addf %137, %138 : vector<2x128xf32>
    %140 = arith.negf %139 : vector<2x128xf32>
    %141 = math.exp %140 : vector<2x128xf32>
    %cst_27 = arith.constant 1.000000e+00 : f32
    %142 = vector.broadcast %cst_27 : f32 to vector<2x128xf32>
    %143 = arith.addf %142, %141 : vector<2x128xf32>
    %144 = arith.divf %142, %143 : vector<2x128xf32>
    %145 = math.tanh %139 : vector<2x128xf32>
    %146 = vector.extract_strided_slice %144 {offsets = [0, 0], sizes = [2, 32], strides = [1, 1]} : vector<2x128xf32> to vector<2x32xf32>
    %147 = vector.extract_strided_slice %144 {offsets = [0, 32], sizes = [2, 32], strides = [1, 1]} : vector<2x128xf32> to vector<2x32xf32>
    %148 = vector.extract_strided_slice %145 {offsets = [0, 64], sizes = [2, 32], strides = [1, 1]} : vector<2x128xf32> to vector<2x32xf32>
    %149 = vector.extract_strided_slice %144 {offsets = [0, 96], sizes = [2, 32], strides = [1, 1]} : vector<2x128xf32> to vector<2x32xf32>
    %150 = arith.mulf %147, %133 : vector<2x32xf32>
    %151 = arith.mulf %146, %148 : vector<2x32xf32>
    %152 = arith.addf %150, %151 : vector<2x32xf32>
    %153 = math.tanh %152 : vector<2x32xf32>
    %154 = arith.mulf %149, %153 : vector<2x32xf32>
    %c14 = arith.constant 14 : index
    %c0_28 = arith.constant 0 : index
    %155 = vector.load %arg8[%c14, %c0_28] : memref<16x32xf32, #tpu.memory_space<vmem>>, vector<2x32xf32>
    tpu.vector_store %arg8[%c14, %c0_28], %154 {strides = array<i32>} : memref<16x32xf32, #tpu.memory_space<vmem>>, vector<2x32xf32>,
    %c0_29 = arith.constant 0 : index
    %c0_30 = arith.constant 0 : index
    %156 = vector.load %arg8[%c0_29, %c0_30] : memref<16x32xf32, #tpu.memory_space<vmem>>, vector<16x32xf32>
    %c0_31 = arith.constant 0 : index
    %c0_32 = arith.constant 0 : index
    %157 = vector.load %arg2[%c0_31, %c0_32] : memref<32x128xf32, #tpu.memory_space<vmem>>, vector<32x128xf32>
    %cst_33 = arith.constant dense<0.000000e+00> : vector<16x128xf32>
    %158 = tpu.matmul %156, %157, %cst_33 {dimension_numbers = #tpu.dot_dimension_numbers<[1], [0], [0], [1], [0, 0, 1, 1], [], []>} : vector<16x32xf32>, vector<32x128xf32>, vector<16x128xf32> -> vector<16x128xf32>
    %c0_34 = arith.constant 0 : index
    %c0_35 = arith.constant 0 : index
    %159 = vector.load %arg4[%c0_34, %c0_35] : memref<1x128xf32, #tpu.memory_space<vmem>>, vector<1x128xf32>
    %160 = vector.broadcast %159 : vector<1x128xf32> to vector<16x128xf32>
    %161 = arith.addf %158, %160 : vector<16x128xf32>
    %c0_36 = arith.constant 0 : index
    %c0_37 = arith.constant 0 : index
    %162 = vector.load %arg3[%c0_36, %c0_37] : memref<32x128xf32, #tpu.memory_space<vmem>>, vector<32x128xf32>
    %cst_38 = arith.constant 0.000000e+00 : f32
    %163 = vector.broadcast %cst_38 : f32 to vector<2x32xf32>
    %cst_39 = arith.constant 0.000000e+00 : f32
    %164 = vector.broadcast %cst_39 : f32 to vector<2x32xf32>
    %165 = vector.extract_strided_slice %161 {offsets = [0, 0], sizes = [2, 128], strides = [1, 1]} : vector<16x128xf32> to vector<2x128xf32>
    %cst_40 = arith.constant dense<0.000000e+00> : vector<2x128xf32>
    %166 = tpu.matmul %163, %162, %cst_40 {dimension_numbers = #tpu.dot_dimension_numbers<[1], [0], [0], [1], [0, 0, 1, 1], [], []>} : vector<2x32xf32>, vector<32x128xf32>, vector<2x128xf32> -> vector<2x128xf32>
    %167 = arith.addf %165, %166 : vector<2x128xf32>
    %168 = arith.negf %167 : vector<2x128xf32>
    %169 = math.exp %168 : vector<2x128xf32>
    %cst_41 = arith.constant 1.000000e+00 : f32
    %170 = vector.broadcast %cst_41 : f32 to vector<2x128xf32>
    %171 = arith.addf %170, %169 : vector<2x128xf32>
    %172 = arith.divf %170, %171 : vector<2x128xf32>
    %173 = math.tanh %167 : vector<2x128xf32>
    %174 = vector.extract_strided_slice %172 {offsets = [0, 0], sizes = [2, 32], strides = [1, 1]} : vector<2x128xf32> to vector<2x32xf32>
    %175 = vector.extract_strided_slice %172 {offsets = [0, 32], sizes = [2, 32], strides = [1, 1]} : vector<2x128xf32> to vector<2x32xf32>
    %176 = vector.extract_strided_slice %173 {offsets = [0, 64], sizes = [2, 32], strides = [1, 1]} : vector<2x128xf32> to vector<2x32xf32>
    %177 = vector.extract_strided_slice %172 {offsets = [0, 96], sizes = [2, 32], strides = [1, 1]} : vector<2x128xf32> to vector<2x32xf32>
    %178 = arith.mulf %175, %164 : vector<2x32xf32>
    %179 = arith.mulf %174, %176 : vector<2x32xf32>
    %180 = arith.addf %178, %179 : vector<2x32xf32>
    %181 = math.tanh %180 : vector<2x32xf32>
    %182 = arith.mulf %177, %181 : vector<2x32xf32>
    %183 = vector.extract_strided_slice %161 {offsets = [2, 0], sizes = [2, 128], strides = [1, 1]} : vector<16x128xf32> to vector<2x128xf32>
    %cst_42 = arith.constant dense<0.000000e+00> : vector<2x128xf32>
    %184 = tpu.matmul %182, %162, %cst_42 {dimension_numbers = #tpu.dot_dimension_numbers<[1], [0], [0], [1], [0, 0, 1, 1], [], []>} : vector<2x32xf32>, vector<32x128xf32>, vector<2x128xf32> -> vector<2x128xf32>
    %185 = arith.addf %183, %184 : vector<2x128xf32>
    %186 = arith.negf %185 : vector<2x128xf32>
    %187 = math.exp %186 : vector<2x128xf32>
    %cst_43 = arith.constant 1.000000e+00 : f32
    %188 = vector.broadcast %cst_43 : f32 to vector<2x128xf32>
    %189 = arith.addf %188, %187 : vector<2x128xf32>
    %190 = arith.divf %188, %189 : vector<2x128xf32>
    %191 = math.tanh %185 : vector<2x128xf32>
    %192 = vector.extract_strided_slice %190 {offsets = [0, 0], sizes = [2, 32], strides = [1, 1]} : vector<2x128xf32> to vector<2x32xf32>
    %193 = vector.extract_strided_slice %190 {offsets = [0, 32], sizes = [2, 32], strides = [1, 1]} : vector<2x128xf32> to vector<2x32xf32>
    %194 = vector.extract_strided_slice %191 {offsets = [0, 64], sizes = [2, 32], strides = [1, 1]} : vector<2x128xf32> to vector<2x32xf32>
    %195 = vector.extract_strided_slice %190 {offsets = [0, 96], sizes = [2, 32], strides = [1, 1]} : vector<2x128xf32> to vector<2x32xf32>
    %196 = arith.mulf %193, %180 : vector<2x32xf32>
    %197 = arith.mulf %192, %194 : vector<2x32xf32>
    %198 = arith.addf %196, %197 : vector<2x32xf32>
    %199 = math.tanh %198 : vector<2x32xf32>
    %200 = arith.mulf %195, %199 : vector<2x32xf32>
    %201 = vector.extract_strided_slice %161 {offsets = [4, 0], sizes = [2, 128], strides = [1, 1]} : vector<16x128xf32> to vector<2x128xf32>
    %cst_44 = arith.constant dense<0.000000e+00> : vector<2x128xf32>
    %202 = tpu.matmul %200, %162, %cst_44 {dimension_numbers = #tpu.dot_dimension_numbers<[1], [0], [0], [1], [0, 0, 1, 1], [], []>} : vector<2x32xf32>, vector<32x128xf32>, vector<2x128xf32> -> vector<2x128xf32>
    %203 = arith.addf %201, %202 : vector<2x128xf32>
    %204 = arith.negf %203 : vector<2x128xf32>
    %205 = math.exp %204 : vector<2x128xf32>
    %cst_45 = arith.constant 1.000000e+00 : f32
    %206 = vector.broadcast %cst_45 : f32 to vector<2x128xf32>
    %207 = arith.addf %206, %205 : vector<2x128xf32>
    %208 = arith.divf %206, %207 : vector<2x128xf32>
    %209 = math.tanh %203 : vector<2x128xf32>
    %210 = vector.extract_strided_slice %208 {offsets = [0, 0], sizes = [2, 32], strides = [1, 1]} : vector<2x128xf32> to vector<2x32xf32>
    %211 = vector.extract_strided_slice %208 {offsets = [0, 32], sizes = [2, 32], strides = [1, 1]} : vector<2x128xf32> to vector<2x32xf32>
    %212 = vector.extract_strided_slice %209 {offsets = [0, 64], sizes = [2, 32], strides = [1, 1]} : vector<2x128xf32> to vector<2x32xf32>
    %213 = vector.extract_strided_slice %208 {offsets = [0, 96], sizes = [2, 32], strides = [1, 1]} : vector<2x128xf32> to vector<2x32xf32>
    %214 = arith.mulf %211, %198 : vector<2x32xf32>
    %215 = arith.mulf %210, %212 : vector<2x32xf32>
    %216 = arith.addf %214, %215 : vector<2x32xf32>
    %217 = math.tanh %216 : vector<2x32xf32>
    %218 = arith.mulf %213, %217 : vector<2x32xf32>
    %219 = vector.extract_strided_slice %161 {offsets = [6, 0], sizes = [2, 128], strides = [1, 1]} : vector<16x128xf32> to vector<2x128xf32>
    %cst_46 = arith.constant dense<0.000000e+00> : vector<2x128xf32>
    %220 = tpu.matmul %218, %162, %cst_46 {dimension_numbers = #tpu.dot_dimension_numbers<[1], [0], [0], [1], [0, 0, 1, 1], [], []>} : vector<2x32xf32>, vector<32x128xf32>, vector<2x128xf32> -> vector<2x128xf32>
    %221 = arith.addf %219, %220 : vector<2x128xf32>
    %222 = arith.negf %221 : vector<2x128xf32>
    %223 = math.exp %222 : vector<2x128xf32>
    %cst_47 = arith.constant 1.000000e+00 : f32
    %224 = vector.broadcast %cst_47 : f32 to vector<2x128xf32>
    %225 = arith.addf %224, %223 : vector<2x128xf32>
    %226 = arith.divf %224, %225 : vector<2x128xf32>
    %227 = math.tanh %221 : vector<2x128xf32>
    %228 = vector.extract_strided_slice %226 {offsets = [0, 0], sizes = [2, 32], strides = [1, 1]} : vector<2x128xf32> to vector<2x32xf32>
    %229 = vector.extract_strided_slice %226 {offsets = [0, 32], sizes = [2, 32], strides = [1, 1]} : vector<2x128xf32> to vector<2x32xf32>
    %230 = vector.extract_strided_slice %227 {offsets = [0, 64], sizes = [2, 32], strides = [1, 1]} : vector<2x128xf32> to vector<2x32xf32>
    %231 = vector.extract_strided_slice %226 {offsets = [0, 96], sizes = [2, 32], strides = [1, 1]} : vector<2x128xf32> to vector<2x32xf32>
    %232 = arith.mulf %229, %216 : vector<2x32xf32>
    %233 = arith.mulf %228, %230 : vector<2x32xf32>
    %234 = arith.addf %232, %233 : vector<2x32xf32>
    %235 = math.tanh %234 : vector<2x32xf32>
    %236 = arith.mulf %231, %235 : vector<2x32xf32>
    %237 = vector.extract_strided_slice %161 {offsets = [8, 0], sizes = [2, 128], strides = [1, 1]} : vector<16x128xf32> to vector<2x128xf32>
    %cst_48 = arith.constant dense<0.000000e+00> : vector<2x128xf32>
    %238 = tpu.matmul %236, %162, %cst_48 {dimension_numbers = #tpu.dot_dimension_numbers<[1], [0], [0], [1], [0, 0, 1, 1], [], []>} : vector<2x32xf32>, vector<32x128xf32>, vector<2x128xf32> -> vector<2x128xf32>
    %239 = arith.addf %237, %238 : vector<2x128xf32>
    %240 = arith.negf %239 : vector<2x128xf32>
    %241 = math.exp %240 : vector<2x128xf32>
    %cst_49 = arith.constant 1.000000e+00 : f32
    %242 = vector.broadcast %cst_49 : f32 to vector<2x128xf32>
    %243 = arith.addf %242, %241 : vector<2x128xf32>
    %244 = arith.divf %242, %243 : vector<2x128xf32>
    %245 = math.tanh %239 : vector<2x128xf32>
    %246 = vector.extract_strided_slice %244 {offsets = [0, 0], sizes = [2, 32], strides = [1, 1]} : vector<2x128xf32> to vector<2x32xf32>
    %247 = vector.extract_strided_slice %244 {offsets = [0, 32], sizes = [2, 32], strides = [1, 1]} : vector<2x128xf32> to vector<2x32xf32>
    %248 = vector.extract_strided_slice %245 {offsets = [0, 64], sizes = [2, 32], strides = [1, 1]} : vector<2x128xf32> to vector<2x32xf32>
    %249 = vector.extract_strided_slice %244 {offsets = [0, 96], sizes = [2, 32], strides = [1, 1]} : vector<2x128xf32> to vector<2x32xf32>
    %250 = arith.mulf %247, %234 : vector<2x32xf32>
    %251 = arith.mulf %246, %248 : vector<2x32xf32>
    %252 = arith.addf %250, %251 : vector<2x32xf32>
    %253 = math.tanh %252 : vector<2x32xf32>
    %254 = arith.mulf %249, %253 : vector<2x32xf32>
    %255 = vector.extract_strided_slice %161 {offsets = [10, 0], sizes = [2, 128], strides = [1, 1]} : vector<16x128xf32> to vector<2x128xf32>
    %cst_50 = arith.constant dense<0.000000e+00> : vector<2x128xf32>
    %256 = tpu.matmul %254, %162, %cst_50 {dimension_numbers = #tpu.dot_dimension_numbers<[1], [0], [0], [1], [0, 0, 1, 1], [], []>} : vector<2x32xf32>, vector<32x128xf32>, vector<2x128xf32> -> vector<2x128xf32>
    %257 = arith.addf %255, %256 : vector<2x128xf32>
    %258 = arith.negf %257 : vector<2x128xf32>
    %259 = math.exp %258 : vector<2x128xf32>
    %cst_51 = arith.constant 1.000000e+00 : f32
    %260 = vector.broadcast %cst_51 : f32 to vector<2x128xf32>
    %261 = arith.addf %260, %259 : vector<2x128xf32>
    %262 = arith.divf %260, %261 : vector<2x128xf32>
    %263 = math.tanh %257 : vector<2x128xf32>
    %264 = vector.extract_strided_slice %262 {offsets = [0, 0], sizes = [2, 32], strides = [1, 1]} : vector<2x128xf32> to vector<2x32xf32>
    %265 = vector.extract_strided_slice %262 {offsets = [0, 32], sizes = [2, 32], strides = [1, 1]} : vector<2x128xf32> to vector<2x32xf32>
    %266 = vector.extract_strided_slice %263 {offsets = [0, 64], sizes = [2, 32], strides = [1, 1]} : vector<2x128xf32> to vector<2x32xf32>
    %267 = vector.extract_strided_slice %262 {offsets = [0, 96], sizes = [2, 32], strides = [1, 1]} : vector<2x128xf32> to vector<2x32xf32>
    %268 = arith.mulf %265, %252 : vector<2x32xf32>
    %269 = arith.mulf %264, %266 : vector<2x32xf32>
    %270 = arith.addf %268, %269 : vector<2x32xf32>
    %271 = math.tanh %270 : vector<2x32xf32>
    %272 = arith.mulf %267, %271 : vector<2x32xf32>
    %273 = vector.extract_strided_slice %161 {offsets = [12, 0], sizes = [2, 128], strides = [1, 1]} : vector<16x128xf32> to vector<2x128xf32>
    %cst_52 = arith.constant dense<0.000000e+00> : vector<2x128xf32>
    %274 = tpu.matmul %272, %162, %cst_52 {dimension_numbers = #tpu.dot_dimension_numbers<[1], [0], [0], [1], [0, 0, 1, 1], [], []>} : vector<2x32xf32>, vector<32x128xf32>, vector<2x128xf32> -> vector<2x128xf32>
    %275 = arith.addf %273, %274 : vector<2x128xf32>
    %276 = arith.negf %275 : vector<2x128xf32>
    %277 = math.exp %276 : vector<2x128xf32>
    %cst_53 = arith.constant 1.000000e+00 : f32
    %278 = vector.broadcast %cst_53 : f32 to vector<2x128xf32>
    %279 = arith.addf %278, %277 : vector<2x128xf32>
    %280 = arith.divf %278, %279 : vector<2x128xf32>
    %281 = math.tanh %275 : vector<2x128xf32>
    %282 = vector.extract_strided_slice %280 {offsets = [0, 0], sizes = [2, 32], strides = [1, 1]} : vector<2x128xf32> to vector<2x32xf32>
    %283 = vector.extract_strided_slice %280 {offsets = [0, 32], sizes = [2, 32], strides = [1, 1]} : vector<2x128xf32> to vector<2x32xf32>
    %284 = vector.extract_strided_slice %281 {offsets = [0, 64], sizes = [2, 32], strides = [1, 1]} : vector<2x128xf32> to vector<2x32xf32>
    %285 = vector.extract_strided_slice %280 {offsets = [0, 96], sizes = [2, 32], strides = [1, 1]} : vector<2x128xf32> to vector<2x32xf32>
    %286 = arith.mulf %283, %270 : vector<2x32xf32>
    %287 = arith.mulf %282, %284 : vector<2x32xf32>
    %288 = arith.addf %286, %287 : vector<2x32xf32>
    %289 = math.tanh %288 : vector<2x32xf32>
    %290 = arith.mulf %285, %289 : vector<2x32xf32>
    %291 = vector.extract_strided_slice %161 {offsets = [14, 0], sizes = [2, 128], strides = [1, 1]} : vector<16x128xf32> to vector<2x128xf32>
    %cst_54 = arith.constant dense<0.000000e+00> : vector<2x128xf32>
    %292 = tpu.matmul %290, %162, %cst_54 {dimension_numbers = #tpu.dot_dimension_numbers<[1], [0], [0], [1], [0, 0, 1, 1], [], []>} : vector<2x32xf32>, vector<32x128xf32>, vector<2x128xf32> -> vector<2x128xf32>
    %293 = arith.addf %291, %292 : vector<2x128xf32>
    %294 = arith.negf %293 : vector<2x128xf32>
    %295 = math.exp %294 : vector<2x128xf32>
    %cst_55 = arith.constant 1.000000e+00 : f32
    %296 = vector.broadcast %cst_55 : f32 to vector<2x128xf32>
    %297 = arith.addf %296, %295 : vector<2x128xf32>
    %298 = arith.divf %296, %297 : vector<2x128xf32>
    %299 = math.tanh %293 : vector<2x128xf32>
    %300 = vector.extract_strided_slice %298 {offsets = [0, 0], sizes = [2, 32], strides = [1, 1]} : vector<2x128xf32> to vector<2x32xf32>
    %301 = vector.extract_strided_slice %298 {offsets = [0, 32], sizes = [2, 32], strides = [1, 1]} : vector<2x128xf32> to vector<2x32xf32>
    %302 = vector.extract_strided_slice %299 {offsets = [0, 64], sizes = [2, 32], strides = [1, 1]} : vector<2x128xf32> to vector<2x32xf32>
    %303 = vector.extract_strided_slice %298 {offsets = [0, 96], sizes = [2, 32], strides = [1, 1]} : vector<2x128xf32> to vector<2x32xf32>
    %304 = arith.mulf %301, %288 : vector<2x32xf32>
    %305 = arith.mulf %300, %302 : vector<2x32xf32>
    %306 = arith.addf %304, %305 : vector<2x32xf32>
    %307 = math.tanh %306 : vector<2x32xf32>
    %308 = arith.mulf %303, %307 : vector<2x32xf32>
    %c0_56 = arith.constant 0 : index
    %c0_57 = arith.constant 0 : index
    %309 = vector.load %arg5[%c0_56, %c0_57] : memref<32x1xf32, #tpu.memory_space<vmem>>, vector<32x1xf32>
    %cst_58 = arith.constant dense<0.000000e+00> : vector<2x1xf32>
    %310 = tpu.matmul %308, %309, %cst_58 {dimension_numbers = #tpu.dot_dimension_numbers<[1], [0], [0], [1], [0, 0, 1, 1], [], []>} : vector<2x32xf32>, vector<32x1xf32>, vector<2x1xf32> -> vector<2x1xf32>
    %c0_59 = arith.constant 0 : index
    %c0_60 = arith.constant 0 : index
    %311 = vector.load %arg6[%c0_59, %c0_60] : memref<1x1xf32, #tpu.memory_space<vmem>>, vector<1x1xf32>
    %312 = vector.broadcast %311 : vector<1x1xf32> to vector<2x1xf32>
    %313 = arith.addf %310, %312 : vector<2x1xf32>
    %c0_61 = arith.constant 0 : index
    %c0_62 = arith.constant 0 : index
    %314 = vector.load %arg7[%c0_61, %c0_62] : memref<2x1xf32, #tpu.memory_space<vmem>>, vector<2x1xf32>
    tpu.vector_store %arg7[%c0_61, %c0_62], %313 {strides = array<i32>} : memref<2x1xf32, #tpu.memory_space<vmem>>, vector<2x1xf32>,
    return
  }
}

</mosaic_0001>

<bundles_post_ra>
// kernel: stock_predictor_forward.1
= control target key start
LH: loop header
LB: loop body
LE: loop exit
PB: predicated region body
PF: predicated region fallthrough
CT: control target
= control target key end

     0   :  { %v2507_v0 = vmov 0.0|0.0   ;;  %vm2508_vm0 = vmmov 0   ;;  %v2509_v4 = vmov 0.0   ;;  %s2510_s10 = smov 64   ;;  %s2511_s11 = smov 32   ;;  %vm137_vm1 = vcmask 254976   ;;  %s2859_s1 = inlined_call_operand.vmem [shape: f32[32,128], index: 1, kind: input, shape index: {}]   ;;  %s2860_s0 = inlined_call_operand.vmem [shape: f32[16,128], index: 0, kind: input, shape index: {}]   ;;  %s2861_s2 = inlined_call_operand.vmem [shape: f32[32,128], index: 2, kind: input, shape index: {}]   ;;  %s2862_s3 = inlined_call_operand.vmem [shape: f32[32,128], index: 3, kind: input, shape index: {}]   ;;  %s2863_s4 = inlined_call_operand.vmem [shape: f32[1,128], index: 4, kind: input, shape index: {}]   ;;  %s2864_s5 = inlined_call_operand.vmem [shape: f32[32,1], index: 5, kind: input, shape index: {}]   ;;  %s2865_s6 = inlined_call_operand.<no memory space> [shape: f32[1,1], index: 6, kind: input, shape index: {}]   ;;  %s2866_s7 = inlined_call_operand.vmem [shape: f32[2,1], index: 7, kind: output, shape index: {}]  }
   0x1   :  { %2264 = vmatprep.subr.bf16.mxu0 %v2507_v0  ;;  %v30_v1 = vld [vmem:[%s2859_s1] sm:$0xff]  ;;  %v31_v2 = vld [vmem:[%s2859_s1 + $0x8] sm:$0xff]  ;;  %v32_v3 = vld [vmem:[%s2859_s1 + $0x10] sm:$0xff]  ;;  %2074 = vmatprep.mubr.msk.f32.mxu0 %vm2508_vm0, %v2509_v4  ;;  %vm34_vm2 = vcmask 261120   ;;  %vm246_vm3 = vcmask 257026   ;;  %vm470_vm4 = vcmask 261126  }
   0x2   :  { %v2564_v5 = vpack.c.bf16 %v31_v2, %v30_v1  ;;  %v33_v6 = vld [vmem:[%s2859_s1 + $0x18] sm:$0xff]  ;;  %2270 = vmatprep.subr.bf16.mxu1 %v2507_v0  ;;  %2085 = vmatprep.mubr.msk.f32.mxu1 %vm2508_vm0, %v2509_v4  ;;  %v2592_v8 = vld [vmem:[%s2860_s0] sm:$0xff]  ;;  %vm358_vm5 = vcmask 259076   ;;  %vm1934_vm6 = vcmask 1024  }
   0x3   :  { %v2573_v7 = vpack.c.bf16 %v33_v6, %v32_v3 }
   0x4   :  { %2266 = vmatpush3.bf16.msra.mxu0 %v2564_v5  ;;  %2272 = vmatpush3.bf16.msra.mxu1 %v2564_v5 }
   0x5   :  { %2267 = vmatprep.subr.bf16.mxu0 %v2507_v0  ;;  %2273 = vmatprep.subr.bf16.mxu1 %v2507_v0 }
   0x8   :  { %2269 = vmatpush3.bf16.msra.mxu0 %v2573_v7  ;;  %2275 = vmatpush3.bf16.msra.mxu1 %v2573_v7 }
   0x9   :  { %2276 = vmatprep.subr.bf16.mxu0 %v2507_v0  ;;  %2282 = vmatprep.subr.bf16.mxu1 %v2507_v0 }
   0xb   :  { %2075 = vmatmul.mubr.f32.vlgmr.msra.gmra.mrb[0].mxu0 %v2509_v4 }
   0xc   :  { %2278 = vmatpush3.bf16.msra.mxu0 %v2564_v5  ;;  %2096 = vmatprep.mubr.msk.f32.mxu0 %vm2508_vm0, %v2509_v4 }
   0xd   :  { %2279 = vmatprep.subr.bf16.mxu0 %v2507_v0 }
  0x10   :  { %2281 = vmatpush3.bf16.msra.mxu0 %v2573_v7 }
  0x11   :  { %2288 = vmatprep.subr.bf16.mxu0 %v2507_v0 }
  0xde   :  { %v104_v9 = vpop.f32.mrb[0].mxu0 }
  0xdf   :  { %v108_v10 = vadd.f32 %v104_v9, %v2592_v8  ;;  %v2076_v11 = vpop.f32.mrb[1].mxu0 }
  0xe1   :  { %2379 = vtanh.f32 %v108_v10  ;;  %v1940_v13 = vmul.f32 -1.442695, %v108_v10 }
  0xe3   :  { %2381 = vpow2.f32 %v1940_v13 }
  0xeb   :  { %v2380_v12 = vpop.eup %2379 }
  0xec   :  { %118 = vrot.lane.b32.xlu0 %v2380_v12, %s2510_s10 }
  0xed   :  { %v2382_v14 = vpop.eup %2381 }
  0xee   :  { %v112_v15 = vadd.f32 1.0, %v2382_v14 }
  0xf0   :  { %2383 = vrcp.f32 %v112_v15 }
  0xfa   :  { %v2384_v16 = vpop.eup %2383 }
  0xfb   :  { %v116_v19 = vmul.f32 0.0, %v2384_v16 }
 0x15e   :  { %v119_v17 = vpop.permute.xlu0 %118 }
 0x15f   :  { %v121_v18 = vmul.f32 %v2384_v16, %v119_v17 }
 0x161   :  { %123 = vrot.lane.b32.xlu0 %v121_v18, %s2511_s11 }
 0x1d3   :  { %v124_v20 = vpop.permute.xlu0 %123 }
 0x1d4   :  { %v126_v21 = vadd.f32 %v124_v20, %v116_v19 }
 0x1d6   :  { %2385 = vtanh.f32 %v126_v21  ;;  %v223_v37 = vrot.slane %v126_v21, 6 }
 0x1e0   :  { %v2386_v22 = vpop.eup %2385 }
 0x1e1   :  { %129 = vrot.lane.b32.xlu1 %v2386_v22, %s2510_s10 }
 0x253   :  { %v130_v23 = vpop.permute.xlu1 %129 }
 0x254   :  { %v132_v24 = vmul.f32 %v2384_v16, %v130_v23 }
 0x256   :  { %134 = vrot.lane.b32.xlu1 %v132_v24, %s2511_s11 }
 0x2c8   :  { %v135_v25 = vpop.permute.xlu1 %134 }
 0x2c9   :  { %138 = vst.msk [vmem:[#allocation2] sm:$0x3] %vm137_vm1, %v135_v25  ;;  %2086 = vmatmul.mubr.msk.f32.vlgmr.msra.gmra.mrb[0].mxu1 %vm34_vm2, %v135_v25 }
 0x2ca   :  { %2284 = vmatpush3.bf16.msra.mxu1 %v2564_v5  ;;  %2107 = vmatprep.mubr.msk.f32.mxu1 %vm2508_vm0, %v2509_v4 }
 0x2cb   :  { %2285 = vmatprep.subr.bf16.mxu1 %v2507_v0 }
 0x2ce   :  { %2287 = vmatpush3.bf16.msra.mxu1 %v2573_v7 }
 0x2cf   :  { %2294 = vmatprep.subr.bf16.mxu1 %v2507_v0 }
 0x39c   :  { %v207_v26 = vpop.f32.mrb[0].mxu1 }
 0x39d   :  { %v212_v27 = vrot.slane %v207_v26, 6  ;;  %v2087_v28 = vpop.f32.mrb[1].mxu1  ;;  %v2654_v26 = vld [vmem:[%s2860_s0 + $0x8] sm:$0xff] }
 0x39f   :  { %v214_v29 = vadd.f32 %v212_v27, %v2592_v8 }
 0x3a1   :  { %2387 = vtanh.f32 %v214_v29  ;;  %v1942_v31 = vmul.f32 -1.442695, %v214_v29 }
 0x3a3   :  { %2389 = vpow2.f32 %v1942_v31 }
 0x3ab   :  { %v2388_v30 = vpop.eup %2387 }
 0x3ac   :  { %227 = vrot.lane.b32.xlu0 %v2388_v30, %s2510_s10 }
 0x3ad   :  { %v2390_v32 = vpop.eup %2389 }
 0x3ae   :  { %v218_v33 = vadd.f32 1.0, %v2390_v32 }
 0x3b0   :  { %2391 = vrcp.f32 %v218_v33 }
 0x3ba   :  { %v2392_v34 = vpop.eup %2391 }
 0x3bb   :  { %v225_v38 = vmul.f32 %v2392_v34, %v223_v37 }
 0x41e   :  { %v228_v35 = vpop.permute.xlu0 %227 }
 0x41f   :  { %v230_v36 = vmul.f32 %v2392_v34, %v228_v35 }
 0x421   :  { %232 = vrot.lane.b32.xlu1 %v230_v36, %s2511_s11 }
 0x493   :  { %v233_v39 = vpop.permute.xlu1 %232 }
 0x494   :  { %v235_v40 = vadd.f32 %v233_v39, %v225_v38 }
 0x496   :  { %2393 = vtanh.f32 %v235_v40  ;;  %v335_v57 = vrot.slane %v235_v40, 6 }
 0x4a0   :  { %v2394_v41 = vpop.eup %2393 }
 0x4a1   :  { %238 = vrot.lane.b32.xlu0 %v2394_v41, %s2510_s10 }
 0x513   :  { %v239_v42 = vpop.permute.xlu0 %238 }
 0x514   :  { %v2611_v43 = vmul.f32 %v2392_v34, %v239_v42 }
 0x516   :  { %v248_v44 = vrot.slane %v2611_v43, 2 }
 0x518   :  { %249 = vrot.lane.b32.xlu1 %v248_v44, %s2511_s11 }
 0x58a   :  { %v250_v45 = vpop.permute.xlu1 %249 }
 0x58b   :  { %2097 = vmatmul.mubr.msk.f32.vlgmr.msra.gmra.mrb[2].mxu0 %vm34_vm2, %v250_v45 }
 0x58c   :  { %2290 = vmatpush3.bf16.msra.mxu0 %v2564_v5  ;;  %2118 = vmatprep.mubr.msk.f32.mxu0 %vm2508_vm0, %v2509_v4 }
 0x58d   :  { %2291 = vmatprep.subr.bf16.mxu0 %v2507_v0 }
 0x590   :  { %2293 = vmatpush3.bf16.msra.mxu0 %v2573_v7 }
 0x591   :  { %2300 = vmatprep.subr.bf16.mxu0 %v2507_v0 }
 0x65e   :  { %v319_v46 = vpop.f32.mrb[2].mxu0 }
 0x65f   :  { %v324_v47 = vrot.slane %v319_v46, 4  ;;  %v2098_v48 = vpop.f32.mrb[3].mxu0 }
 0x661   :  { %v326_v49 = vadd.f32 %v324_v47, %v2592_v8 }
 0x663   :  { %2395 = vtanh.f32 %v326_v49  ;;  %v1944_v51 = vmul.f32 -1.442695, %v326_v49 }
 0x665   :  { %2397 = vpow2.f32 %v1944_v51 }
 0x66d   :  { %v2396_v50 = vpop.eup %2395 }
 0x66e   :  { %339 = vrot.lane.b32.xlu0 %v2396_v50, %s2510_s10 }
 0x66f   :  { %v2398_v52 = vpop.eup %2397 }
 0x670   :  { %v330_v53 = vadd.f32 1.0, %v2398_v52 }
 0x672   :  { %2399 = vrcp.f32 %v330_v53 }
 0x67c   :  { %v2400_v54 = vpop.eup %2399 }
 0x67d   :  { %v337_v58 = vmul.f32 %v2400_v54, %v335_v57 }
 0x6e0   :  { %v340_v55 = vpop.permute.xlu0 %339 }
 0x6e1   :  { %v342_v56 = vmul.f32 %v2400_v54, %v340_v55 }
 0x6e3   :  { %344 = vrot.lane.b32.xlu1 %v342_v56, %s2511_s11 }
 0x755   :  { %v345_v59 = vpop.permute.xlu1 %344 }
 0x756   :  { %v347_v60 = vadd.f32 %v345_v59, %v337_v58 }
 0x758   :  { %2401 = vtanh.f32 %v347_v60  ;;  %v447_v18 = vrot.slane %v347_v60, 6 }
 0x762   :  { %v2402_v61 = vpop.eup %2401 }
 0x763   :  { %350 = vrot.lane.b32.xlu0 %v2402_v61, %s2510_s10 }
 0x7d5   :  { %v351_v62 = vpop.permute.xlu0 %350 }
 0x7d6   :  { %v2626_v63 = vmul.f32 %v2400_v54, %v351_v62 }
 0x7d8   :  { %v360_v1 = vrot.slane %v2626_v63, 4 }
 0x7da   :  { %361 = vrot.lane.b32.xlu1 %v360_v1, %s2511_s11 }
 0x84c   :  { %v362_v2 = vpop.permute.xlu1 %361 }
 0x84d   :  { %2108 = vmatmul.mubr.msk.f32.vlgmr.msra.gmra.mrb[2].mxu1 %vm34_vm2, %v362_v2 }
 0x84e   :  { %2296 = vmatpush3.bf16.msra.mxu1 %v2564_v5  ;;  %2129 = vmatprep.mubr.msk.f32.mxu1 %vm2508_vm0, %v2509_v4 }
 0x84f   :  { %2297 = vmatprep.subr.bf16.mxu1 %v2507_v0 }
 0x852   :  { %2299 = vmatpush3.bf16.msra.mxu1 %v2573_v7 }
 0x853   :  { %2306 = vmatprep.subr.bf16.mxu1 %v2507_v0 }
 0x920   :  { %v431_v3 = vpop.f32.mrb[2].mxu1 }
 0x921   :  { %v436_v6 = vrot.slane %v431_v3, 2  ;;  %v2109_v9 = vpop.f32.mrb[3].mxu1 }
 0x923   :  { %v438_v10 = vadd.f32 %v436_v6, %v2592_v8 }
 0x925   :  { %2403 = vtanh.f32 %v438_v10  ;;  %v1946_v12 = vmul.f32 -1.442695, %v438_v10 }
 0x927   :  { %2405 = vpow2.f32 %v1946_v12 }
 0x92f   :  { %v2404_v11 = vpop.eup %2403 }
 0x930   :  { %451 = vrot.lane.b32.xlu0 %v2404_v11, %s2510_s10 }
 0x931   :  { %v2406_v13 = vpop.eup %2405 }
 0x932   :  { %v442_v14 = vadd.f32 1.0, %v2406_v13 }
 0x934   :  { %2407 = vrcp.f32 %v442_v14 }
 0x93e   :  { %v2408_v15 = vpop.eup %2407 }
 0x93f   :  { %v449_v19 = vmul.f32 %v2408_v15, %v447_v18 }
 0x9a2   :  { %v452_v16 = vpop.permute.xlu0 %451 }
 0x9a3   :  { %v454_v17 = vmul.f32 %v2408_v15, %v452_v16 }
 0x9a5   :  { %456 = vrot.lane.b32.xlu1 %v454_v17, %s2511_s11 }
 0xa17   :  { %v457_v20 = vpop.permute.xlu1 %456 }
 0xa18   :  { %v459_v21 = vadd.f32 %v457_v20, %v449_v19 }
 0xa1a   :  { %2409 = vtanh.f32 %v459_v21  ;;  %v556_v37 = vrot.slane %v459_v21, 6 }
 0xa24   :  { %v2410_v8 = vpop.eup %2409 }
 0xa25   :  { %462 = vrot.lane.b32.xlu0 %v2410_v8, %s2510_s10 }
 0xa97   :  { %v463_v22 = vpop.permute.xlu0 %462 }
 0xa98   :  { %v2641_v23 = vmul.f32 %v2408_v15, %v463_v22 }
 0xa9a   :  { %v472_v24 = vrot.slane %v2641_v23, 6 }
 0xa9c   :  { %473 = vrot.lane.b32.xlu1 %v472_v24, %s2511_s11 }
 0xb0e   :  { %v474_v25 = vpop.permute.xlu1 %473 }
 0xb0f   :  { %2119 = vmatmul.mubr.msk.f32.vlgmr.msra.gmra.mrb[4].mxu0 %vm34_vm2, %v474_v25 }
 0xb10   :  { %2302 = vmatpush3.bf16.msra.mxu0 %v2564_v5  ;;  %2140 = vmatprep.mubr.msk.f32.mxu0 %vm2508_vm0, %v2509_v4 }
 0xb11   :  { %2303 = vmatprep.subr.bf16.mxu0 %v2507_v0 }
 0xb14   :  { %2305 = vmatpush3.bf16.msra.mxu0 %v2573_v7 }
 0xbe2   :  { %v543_v27 = vpop.f32.mrb[4].mxu0 }
 0xbe3   :  { %v547_v28 = vadd.f32 %v543_v27, %v2654_v26  ;;  %v2120_v29 = vpop.f32.mrb[5].mxu0 }
 0xbe5   :  { %2411 = vtanh.f32 %v547_v28  ;;  %v1948_v31 = vmul.f32 -1.442695, %v547_v28 }
 0xbe7   :  { %2413 = vpow2.f32 %v1948_v31 }
 0xbef   :  { %v2412_v30 = vpop.eup %2411 }
 0xbf0   :  { %560 = vrot.lane.b32.xlu0 %v2412_v30, %s2510_s10 }
 0xbf1   :  { %v2414_v32 = vpop.eup %2413 }
 0xbf2   :  { %v551_v33 = vadd.f32 1.0, %v2414_v32 }
 0xbf4   :  { %2415 = vrcp.f32 %v551_v33 }
 0xbfe   :  { %v2416_v34 = vpop.eup %2415 }
 0xbff   :  { %v558_v38 = vmul.f32 %v2416_v34, %v556_v37 }
 0xc62   :  { %v561_v35 = vpop.permute.xlu0 %560 }
 0xc63   :  { %v563_v36 = vmul.f32 %v2416_v34, %v561_v35 }
 0xc65   :  { %565 = vrot.lane.b32.xlu1 %v563_v36, %s2511_s11 }
 0xcd7   :  { %v566_v39 = vpop.permute.xlu1 %565 }
 0xcd8   :  { %v568_v40 = vadd.f32 %v566_v39, %v558_v38 }
 0xcda   :  { %2417 = vtanh.f32 %v568_v40 }
 0xce4   :  { %v2418_v41 = vpop.eup %2417 }
 0xce5   :  { %571 = vrot.lane.b32.xlu0 %v2418_v41, %s2510_s10 }
 0xd57   :  { %v572_v42 = vpop.permute.xlu0 %571 }
 0xd58   :  { %v574_v44 = vmul.f32 %v2416_v34, %v572_v42 }
 0xd5a   :  { %576 = vrot.lane.b32.xlu1 %v574_v44, %s2511_s11 }
 0xdcc   :  { %v577_v45 = vpop.permute.xlu1 %576 }
 0xdcd   :  { %579 = vst.msk [vmem:[#allocation2 + $0x8] sm:$0x3] %vm137_vm1, %v577_v45  ;;  %2130 = vmatmul.mubr.msk.f32.vlgmr.msra.gmra.mrb[4].mxu1 %vm34_vm2, %v577_v45  ;;  %v913_v45 = vld [vmem:[%s2861_s2 + $0x8] sm:$0xff] }
 0xdce   :  { %2308 = vmatpush3.bf16.msra.mxu1 %v2564_v5  ;;  %2151 = vmatprep.mubr.msk.f32.mxu1 %vm2508_vm0, %v2509_v4 }
 0xdcf   :  { %2309 = vmatprep.subr.bf16.mxu1 %v2507_v0 }
 0xdd2   :  { %2311 = vmatpush3.bf16.msra.mxu1 %v2573_v7  ;;  %v664_v7 = vrot.slane %v568_v40, 6 }
 0xdd3   :  { %2320 = vmatprep.subr.bf16.mxu1 %v2507_v0 }
 0xea0   :  { %v648_v46 = vpop.f32.mrb[4].mxu1 }
 0xea1   :  { %v653_v47 = vrot.slane %v648_v46, 6  ;;  %v2131_v48 = vpop.f32.mrb[5].mxu1 }
 0xea2   :  { %v914_v48 = vld [vmem:[%s2861_s2 + $0x10] sm:$0xff] }
 0xea3   :  { %v655_v49 = vadd.f32 %v653_v47, %v2654_v26  ;;  %v1004_v47 = vld [vmem:[%s2862_s3] sm:$0xff] }
 0xea5   :  { %2419 = vtanh.f32 %v655_v49  ;;  %v1950_v51 = vmul.f32 -1.442695, %v655_v49 }
 0xea7   :  { %2421 = vpow2.f32 %v1950_v51  ;;  %v1006_v51 = vld [vmem:[%s2862_s3 + $0x10] sm:$0xff] }
 0xeaf   :  { %v2420_v50 = vpop.eup %2419 }
 0xeb0   :  { %668 = vrot.lane.b32.xlu0 %v2420_v50, %s2510_s10  ;;  %v915_v50 = vld [vmem:[%s2861_s2 + $0x18] sm:$0xff] }
 0xeb1   :  { %v2422_v5 = vpop.eup %2421 }
 0xeb2   :  { %v659_v52 = vadd.f32 1.0, %v2422_v5  ;;  %v1007_v5 = vld [vmem:[%s2862_s3 + $0x18] sm:$0xff] }
 0xeb4   :  { %2423 = vrcp.f32 %v659_v52  ;;  %v2316_v52 = vpack.c.bf16 %v915_v50, %v914_v48 }
 0xebe   :  { %v2424_v53 = vpop.eup %2423 }
 0xebf   :  { %v666_v56 = vmul.f32 %v2424_v53, %v664_v7 }
 0xf22   :  { %v669_v54 = vpop.permute.xlu0 %668 }
 0xf23   :  { %v671_v55 = vmul.f32 %v2424_v53, %v669_v54 }
 0xf25   :  { %673 = vrot.lane.b32.xlu1 %v671_v55, %s2511_s11 }
 0xf97   :  { %v674_v57 = vpop.permute.xlu1 %673 }
 0xf98   :  { %v676_v58 = vadd.f32 %v674_v57, %v666_v56 }
 0xf9a   :  { %2425 = vtanh.f32 %v676_v58  ;;  %v775_v17 = vrot.slane %v676_v58, 6 }
 0xfa4   :  { %v2426_v59 = vpop.eup %2425 }
 0xfa5   :  { %679 = vrot.lane.b32.xlu0 %v2426_v59, %s2510_s10 }
0x1017   :  { %v680_v60 = vpop.permute.xlu0 %679 }
0x1018   :  { %v2673_v61 = vmul.f32 %v2424_v53, %v680_v60  ;;  %v2729_v53 = vpack.c.bf16 %v1007_v5, %v1006_v51 }
0x101a   :  { %v688_v62 = vrot.slane %v2673_v61, 2 }
0x101c   :  { %689 = vrot.lane.b32.xlu1 %v688_v62, %s2511_s11  ;;  %v1955_v62 = vld [vmem:[%s2863_s4] ss:$0 sm:$0xff] }
0x108e   :  { %v690_v1 = vpop.permute.xlu1 %689 }
0x108f   :  { %2141 = vmatmul.mubr.msk.f32.vlgmr.msra.gmra.mrb[6].mxu0 %vm34_vm2, %v690_v1 }
0x1162   :  { %v759_v2 = vpop.f32.mrb[6].mxu0 }
0x1163   :  { %v764_v3 = vrot.slane %v759_v2, 4  ;;  %v2142_v6 = vpop.f32.mrb[7].mxu0 }
0x1165   :  { %v766_v9 = vadd.f32 %v764_v3, %v2654_v26 }
0x1167   :  { %2427 = vtanh.f32 %v766_v9  ;;  %v1952_v11 = vmul.f32 -1.442695, %v766_v9 }
0x1169   :  { %2429 = vpow2.f32 %v1952_v11 }
0x1171   :  { %v2428_v10 = vpop.eup %2427 }
0x1172   :  { %779 = vrot.lane.b32.xlu0 %v2428_v10, %s2510_s10 }
0x1173   :  { %v2430_v12 = vpop.eup %2429 }
0x1174   :  { %v770_v13 = vadd.f32 1.0, %v2430_v12 }
0x1176   :  { %2431 = vrcp.f32 %v770_v13 }
0x1180   :  { %v2432_v14 = vpop.eup %2431 }
0x1181   :  { %v777_v18 = vmul.f32 %v2432_v14, %v775_v17 }
0x11e4   :  { %v780_v15 = vpop.permute.xlu0 %779 }
0x11e5   :  { %v782_v16 = vmul.f32 %v2432_v14, %v780_v15 }
0x11e7   :  { %784 = vrot.lane.b32.xlu1 %v782_v16, %s2511_s11 }
0x1259   :  { %v785_v19 = vpop.permute.xlu1 %784 }
0x125a   :  { %v787_v20 = vadd.f32 %v785_v19, %v777_v18 }
0x125c   :  { %2433 = vtanh.f32 %v787_v20 }
0x1266   :  { %v2434_v21 = vpop.eup %2433 }
0x1267   :  { %790 = vrot.lane.b32.xlu0 %v2434_v21, %s2510_s10 }
0x12d9   :  { %v791_v8 = vpop.permute.xlu0 %790 }
0x12da   :  { %v793_v22 = vmul.f32 %v2432_v14, %v791_v8 }
0x12dc   :  { %v799_v24 = vrot.slane %v793_v22, 4 }
0x12de   :  { %800 = vrot.lane.b32.xlu1 %v799_v24, %s2511_s11 }
0x1350   :  { %v801_v25 = vpop.permute.xlu1 %800 }
0x1351   :  { %2152 = vmatmul.mubr.msk.f32.vlgmr.msra.gmra.mrb[6].mxu1 %vm34_vm2, %v801_v25 }
0x1352   :  { %2173 = vmatprep.mubr.msk.f32.mxu1 %vm2508_vm0, %v2509_v4 }
0x1424   :  { %v870_v27 = vpop.f32.mrb[6].mxu1 }
0x1425   :  { %v875_v28 = vrot.slane %v870_v27, 2  ;;  %v2153_v29 = vpop.f32.mrb[7].mxu1 }
0x1427   :  { %v877_v30 = vadd.f32 %v875_v28, %v2654_v26  ;;  %v886_v26 = vrot.slane %v787_v20, 6 }
0x1429   :  { %2435 = vtanh.f32 %v877_v30  ;;  %v1954_v32 = vmul.f32 -1.442695, %v877_v30 }
0x142b   :  { %2437 = vpow2.f32 %v1954_v32 }
0x1433   :  { %v2436_v31 = vpop.eup %2435 }
0x1434   :  { %890 = vrot.lane.b32.xlu0 %v2436_v31, %s2510_s10 }
0x1435   :  { %v2438_v33 = vpop.eup %2437 }
0x1436   :  { %v881_v34 = vadd.f32 1.0, %v2438_v33 }
0x1438   :  { %2439 = vrcp.f32 %v881_v34 }
0x1442   :  { %v2440_v35 = vpop.eup %2439 }
0x1443   :  { %v888_v38 = vmul.f32 %v2440_v35, %v886_v26 }
0x14a6   :  { %v891_v36 = vpop.permute.xlu0 %890 }
0x14a7   :  { %v893_v37 = vmul.f32 %v2440_v35, %v891_v36 }
0x14a9   :  { %895 = vrot.lane.b32.xlu1 %v893_v37, %s2511_s11 }
0x14ad   :  { %243 = vrot.lane.b32.xlu1 %v2611_v43, %s2511_s11 }
0x14b1   :  { %467 = vrot.lane.b32.xlu1 %v2641_v23, %s2511_s11  ;;  %v912_v23 = vld [vmem:[%s2861_s2] sm:$0xff] }
0x14b2   :  { %v2312_v46 = vpack.c.bf16 %v913_v45, %v912_v23 }
0x14b4   :  { %2313 = vmatprep.subr.bf16.mxu0 %v2312_v46 }
0x14b5   :  { %795 = vrot.lane.b32.xlu1 %v793_v22, %s2511_s11  ;;  %2315 = vmatpush3.bf16.msra.mxu0 %v2312_v46 }
0x14b6   :  { %2317 = vmatprep.subr.bf16.mxu0 %v2316_v52 }
0x14b9   :  { %2319 = vmatpush3.bf16.msra.mxu0 %v2316_v52 }
0x14ba   :  { %2326 = vmatprep.subr.bf16.mxu0 %v2507_v0 }
0x151b   :  { %v896_v39 = vpop.permute.xlu1 %895 }
0x151c   :  { %v898_v40 = vadd.f32 %v896_v39, %v888_v38 }
0x151e   :  { %2441 = vtanh.f32 %v898_v40 }
0x151f   :  { %v244_v41 = vpop.permute.xlu1 %243 }
0x1520   :  { %247 = vst.msk [vmem:[#allocation2] sm:$0xc] %vm246_vm3, %v244_v41 }
0x1523   :  { %v468_v42 = vpop.permute.xlu1 %467 }
0x1524   :  { %471 = vst.msk [vmem:[#allocation2] sm:$0xc0] %vm470_vm4, %v468_v42 }
0x1527   :  { %v796_v43 = vpop.permute.xlu1 %795 }
0x1528   :  { %v2442_v44 = vpop.eup %2441  ;;  %798 = vst.msk [vmem:[#allocation2 + $0x8] sm:$0x30] %vm358_vm5, %v796_v43 }
0x1529   :  { %901 = vrot.lane.b32.xlu0 %v2442_v44, %s2510_s10 }
0x152d   :  { %355 = vrot.lane.b32.xlu0 %v2626_v63, %s2511_s11  ;;  %v1005_v63 = vld [vmem:[%s2862_s3 + $0x8] sm:$0xff] }
0x152e   :  { %v2717_v49 = vpack.c.bf16 %v1005_v63, %v1004_v47 }
0x1530   :  { %2322 = vmatpush3.bf16.msra.mxu1 %v2717_v49 }
0x1531   :  { %684 = vrot.lane.b32.xlu0 %v2673_v61, %s2511_s11  ;;  %2323 = vmatprep.subr.bf16.mxu1 %v2507_v0 }
0x1534   :  { %2325 = vmatpush3.bf16.msra.mxu1 %v2729_v53 }
0x1535   :  { %2332 = vmatprep.subr.bf16.mxu1 %v2507_v0 }
0x1537   :  { %2174 = vmatmul.mubr.f32.vlgmr.msra.gmra.mrb[8].mxu1 %v2509_v4 }
0x1538   :  { %2334 = vmatpush3.bf16.msra.mxu1 %v2717_v49  ;;  %2195 = vmatprep.mubr.msk.f32.mxu1 %vm2508_vm0, %v2509_v4 }
0x1539   :  { %2335 = vmatprep.subr.bf16.mxu1 %v2507_v0 }
0x153c   :  { %2337 = vmatpush3.bf16.msra.mxu1 %v2729_v53 }
0x153d   :  { %2344 = vmatprep.subr.bf16.mxu1 %v2507_v0 }
0x159b   :  { %v902_v54 = vpop.permute.xlu0 %901 }
0x159c   :  { %v904_v55 = vmul.f32 %v2440_v35, %v902_v54 }
0x159e   :  { %906 = vrot.lane.b32.xlu0 %v904_v55, %s2511_s11 }
0x159f   :  { %v356_v7 = vpop.permute.xlu0 %355 }
0x15a0   :  { %359 = vst.msk [vmem:[#allocation2] sm:$0x30] %vm358_vm5, %v356_v7 }
0x15a3   :  { %v685_v56 = vpop.permute.xlu0 %684 }
0x15a4   :  { %687 = vst.msk [vmem:[#allocation2 + $0x8] sm:$0xc] %vm246_vm3, %v685_v56 }
0x15a7   :  { %v910_v57 = vld [vmem:[#allocation2] sm:$0xff] }
0x15a8   :  { %2162 = vmatprep.mubr.msk.f32.mxu0 %vm34_vm2, %v910_v57 }
0x160a   :  { %v1074_v60 = vpop.f32.mrb[8].mxu1 }
0x160b   :  { %v2175_v61 = vpop.f32.mrb[9].mxu1 }
0x1610   :  { %v907_v58 = vpop.permute.xlu0 %906 }
0x1611   :  { %909 = vst.msk [vmem:[#allocation2 + $0x8] sm:$0xc0] %vm470_vm4, %v907_v58 }
0x1618   :  { %v911_v59 = vld [vmem:[#allocation2 + $0x8] sm:$0xff] }
0x1619   :  { %2163 = vmatmul.mubr.msk.f32.vlgmr.msra.gmra.mrb[8].mxu0 %vm34_vm2, %v911_v59 }
0x161a   :  { %2328 = vmatpush3.bf16.msra.mxu0 %v2717_v49  ;;  %2184 = vmatprep.mubr.msk.f32.mxu0 %vm2508_vm0, %v2509_v4 }
0x161b   :  { %2329 = vmatprep.subr.bf16.mxu0 %v2507_v0 }
0x161e   :  { %2331 = vmatpush3.bf16.msra.mxu0 %v2729_v53 }
0x161f   :  { %2338 = vmatprep.subr.bf16.mxu0 %v2507_v0 }
0x16ec   :  { %v2164_v1 = vpop.f32.mrb[8].mxu0 }
0x16ed   :  { %v2757_v2 = vadd.f32 %v2164_v1, %v1955_v62  ;;  %v995_v3 = vpop.f32.mrb[9].mxu0 }
0x16ee   :  { %v2759_v6 = vadd.f32 %v1955_v62, %v995_v3 }
0x16f0   :  { %v1078_v9 = vadd.f32 %v1074_v60, %v2759_v6 }
0x16f2   :  { %2443 = vtanh.f32 %v1078_v9  ;;  %v1958_v11 = vmul.f32 -1.442695, %v1078_v9 }
0x16f4   :  { %2445 = vpow2.f32 %v1958_v11 }
0x16fc   :  { %v2444_v10 = vpop.eup %2443 }
0x16fd   :  { %1088 = vrot.lane.b32.xlu1 %v2444_v10, %s2510_s10 }
0x16fe   :  { %v2446_v12 = vpop.eup %2445 }
0x16ff   :  { %v1082_v13 = vadd.f32 1.0, %v2446_v12 }
0x1701   :  { %2447 = vrcp.f32 %v1082_v13 }
0x170b   :  { %v2448_v14 = vpop.eup %2447 }
0x170c   :  { %v1086_v17 = vmul.f32 0.0, %v2448_v14 }
0x176f   :  { %v1089_v15 = vpop.permute.xlu1 %1088 }
0x1770   :  { %v1091_v16 = vmul.f32 %v2448_v14, %v1089_v15 }
0x1772   :  { %1093 = vrot.lane.b32.xlu0 %v1091_v16, %s2511_s11 }
0x17e4   :  { %v1094_v18 = vpop.permute.xlu0 %1093 }
0x17e5   :  { %v1096_v19 = vadd.f32 %v1094_v18, %v1086_v17 }
0x17e7   :  { %2449 = vtanh.f32 %v1096_v19  ;;  %v1190_v36 = vrot.slane %v1096_v19, 6 }
0x17f1   :  { %v2450_v20 = vpop.eup %2449 }
0x17f2   :  { %1099 = vrot.lane.b32.xlu1 %v2450_v20, %s2510_s10 }
0x1864   :  { %v1100_v21 = vpop.permute.xlu1 %1099 }
0x1865   :  { %v1102_v8 = vmul.f32 %v2448_v14, %v1100_v21 }
0x1867   :  { %1104 = vrot.lane.b32.xlu0 %v1102_v8, %s2511_s11 }
0x18d9   :  { %v1105_v22 = vpop.permute.xlu0 %1104 }
0x18da   :  { %2185 = vmatmul.mubr.msk.f32.vlgmr.msra.gmra.mrb[10].mxu0 %vm34_vm2, %v1105_v22 }
0x18db   :  { %2340 = vmatpush3.bf16.msra.mxu0 %v2717_v49  ;;  %2206 = vmatprep.mubr.msk.f32.mxu0 %vm2508_vm0, %v2509_v4 }
0x18dc   :  { %2341 = vmatprep.subr.bf16.mxu0 %v2507_v0 }
0x18df   :  { %2343 = vmatpush3.bf16.msra.mxu0 %v2729_v53 }
0x18e0   :  { %2350 = vmatprep.subr.bf16.mxu0 %v2507_v0 }
0x19ad   :  { %v1174_v24 = vpop.f32.mrb[10].mxu0 }
0x19ae   :  { %v1179_v25 = vrot.slane %v1174_v24, 6  ;;  %v2186_v27 = vpop.f32.mrb[11].mxu0 }
0x19b0   :  { %v1181_v28 = vadd.f32 %v1179_v25, %v2759_v6 }
0x19b2   :  { %2451 = vtanh.f32 %v1181_v28  ;;  %v1960_v30 = vmul.f32 -1.442695, %v1181_v28 }
0x19b4   :  { %2453 = vpow2.f32 %v1960_v30 }
0x19bc   :  { %v2452_v29 = vpop.eup %2451 }
0x19bd   :  { %1194 = vrot.lane.b32.xlu1 %v2452_v29, %s2510_s10 }
0x19be   :  { %v2454_v31 = vpop.eup %2453 }
0x19bf   :  { %v1185_v32 = vadd.f32 1.0, %v2454_v31 }
0x19c1   :  { %2455 = vrcp.f32 %v1185_v32 }
0x19cb   :  { %v2456_v33 = vpop.eup %2455 }
0x19cc   :  { %v1192_v37 = vmul.f32 %v2456_v33, %v1190_v36 }
0x1a2f   :  { %v1195_v34 = vpop.permute.xlu1 %1194 }
0x1a30   :  { %v1197_v35 = vmul.f32 %v2456_v33, %v1195_v34 }
0x1a32   :  { %1199 = vrot.lane.b32.xlu0 %v1197_v35, %s2511_s11 }
0x1aa4   :  { %v1200_v26 = vpop.permute.xlu0 %1199 }
0x1aa5   :  { %v1202_v38 = vadd.f32 %v1200_v26, %v1192_v37 }
0x1aa7   :  { %2457 = vtanh.f32 %v1202_v38  ;;  %v1297_v54 = vrot.slane %v1202_v38, 6 }
0x1ab1   :  { %v2458_v39 = vpop.eup %2457 }
0x1ab2   :  { %1205 = vrot.lane.b32.xlu1 %v2458_v39, %s2510_s10 }
0x1b24   :  { %v1206_v40 = vpop.permute.xlu1 %1205 }
0x1b25   :  { %v1208_v41 = vmul.f32 %v2456_v33, %v1206_v40 }
0x1b27   :  { %v1210_v42 = vrot.slane %v1208_v41, 2 }
0x1b29   :  { %1211 = vrot.lane.b32.xlu0 %v1210_v42, %s2511_s11 }
0x1b9b   :  { %v1212_v43 = vpop.permute.xlu0 %1211 }
0x1b9c   :  { %2196 = vmatmul.mubr.msk.f32.vlgmr.msra.gmra.mrb[10].mxu1 %vm34_vm2, %v1212_v43 }
0x1b9d   :  { %2346 = vmatpush3.bf16.msra.mxu1 %v2717_v49  ;;  %2217 = vmatprep.mubr.msk.f32.mxu1 %vm2508_vm0, %v2509_v4 }
0x1b9e   :  { %2347 = vmatprep.subr.bf16.mxu1 %v2507_v0 }
0x1ba1   :  { %2349 = vmatpush3.bf16.msra.mxu1 %v2729_v53 }
0x1ba2   :  { %2356 = vmatprep.subr.bf16.mxu1 %v2507_v0 }
0x1c6f   :  { %v1281_v44 = vpop.f32.mrb[10].mxu1 }
0x1c70   :  { %v1286_v23 = vrot.slane %v1281_v44, 4  ;;  %v2197_v45 = vpop.f32.mrb[11].mxu1 }
0x1c72   :  { %v1288_v46 = vadd.f32 %v1286_v23, %v2759_v6 }
0x1c74   :  { %2459 = vtanh.f32 %v1288_v46  ;;  %v1962_v63 = vmul.f32 -1.442695, %v1288_v46 }
0x1c76   :  { %2461 = vpow2.f32 %v1962_v63 }
0x1c7e   :  { %v2460_v47 = vpop.eup %2459 }
0x1c7f   :  { %1301 = vrot.lane.b32.xlu1 %v2460_v47, %s2510_s10 }
0x1c80   :  { %v2462_v48 = vpop.eup %2461 }
0x1c81   :  { %v1292_v50 = vadd.f32 1.0, %v2462_v48 }
0x1c83   :  { %2463 = vrcp.f32 %v1292_v50 }
0x1c8d   :  { %v2464_v51 = vpop.eup %2463 }
0x1c8e   :  { %v1299_v55 = vmul.f32 %v2464_v51, %v1297_v54 }
0x1cf1   :  { %v1302_v5 = vpop.permute.xlu1 %1301 }
0x1cf2   :  { %v1304_v52 = vmul.f32 %v2464_v51, %v1302_v5 }
0x1cf4   :  { %1306 = vrot.lane.b32.xlu0 %v1304_v52, %s2511_s11 }
0x1d66   :  { %v1307_v7 = vpop.permute.xlu0 %1306 }
0x1d67   :  { %v1309_v56 = vadd.f32 %v1307_v7, %v1299_v55 }
0x1d69   :  { %2465 = vtanh.f32 %v1309_v56  ;;  %v1404_v17 = vrot.slane %v1309_v56, 6 }
0x1d73   :  { %v2466_v57 = vpop.eup %2465 }
0x1d74   :  { %1312 = vrot.lane.b32.xlu1 %v2466_v57, %s2510_s10 }
0x1de6   :  { %v1313_v58 = vpop.permute.xlu1 %1312 }
0x1de7   :  { %v1315_v59 = vmul.f32 %v2464_v51, %v1313_v58 }
0x1de9   :  { %v1317_v60 = vrot.slane %v1315_v59, 4 }
0x1deb   :  { %1318 = vrot.lane.b32.xlu0 %v1317_v60, %s2511_s11 }
0x1e5d   :  { %v1319_v61 = vpop.permute.xlu0 %1318 }
0x1e5e   :  { %2207 = vmatmul.mubr.msk.f32.vlgmr.msra.gmra.mrb[12].mxu0 %vm34_vm2, %v1319_v61 }
0x1e5f   :  { %2352 = vmatpush3.bf16.msra.mxu0 %v2717_v49  ;;  %2228 = vmatprep.mubr.msk.f32.mxu0 %vm2508_vm0, %v2509_v4 }
0x1e60   :  { %2353 = vmatprep.subr.bf16.mxu0 %v2507_v0 }
0x1e63   :  { %2355 = vmatpush3.bf16.msra.mxu0 %v2729_v53 }
0x1e64   :  { %2362 = vmatprep.subr.bf16.mxu0 %v2507_v0 }
0x1f31   :  { %v1388_v62 = vpop.f32.mrb[12].mxu0 }
0x1f32   :  { %v1393_v1 = vrot.slane %v1388_v62, 2  ;;  %v2208_v3 = vpop.f32.mrb[13].mxu0 }
0x1f34   :  { %v1395_v9 = vadd.f32 %v1393_v1, %v2759_v6 }
0x1f36   :  { %2467 = vtanh.f32 %v1395_v9  ;;  %v1964_v11 = vmul.f32 -1.442695, %v1395_v9 }
0x1f38   :  { %2469 = vpow2.f32 %v1964_v11 }
0x1f40   :  { %v2468_v10 = vpop.eup %2467 }
0x1f41   :  { %1408 = vrot.lane.b32.xlu1 %v2468_v10, %s2510_s10 }
0x1f42   :  { %v2470_v12 = vpop.eup %2469 }
0x1f43   :  { %v1399_v13 = vadd.f32 1.0, %v2470_v12 }
0x1f45   :  { %2471 = vrcp.f32 %v1399_v13 }
0x1f4f   :  { %v2472_v14 = vpop.eup %2471 }
0x1f50   :  { %v1406_v18 = vmul.f32 %v2472_v14, %v1404_v17 }
0x1fb3   :  { %v1409_v15 = vpop.permute.xlu1 %1408 }
0x1fb4   :  { %v1411_v16 = vmul.f32 %v2472_v14, %v1409_v15 }
0x1fb6   :  { %1413 = vrot.lane.b32.xlu0 %v1411_v16, %s2511_s11 }
0x2028   :  { %v1414_v19 = vpop.permute.xlu0 %1413 }
0x2029   :  { %v1416_v20 = vadd.f32 %v1414_v19, %v1406_v18 }
0x202b   :  { %2473 = vtanh.f32 %v1416_v20  ;;  %v1508_v36 = vrot.slane %v1416_v20, 6 }
0x2035   :  { %v2474_v6 = vpop.eup %2473 }
0x2036   :  { %1419 = vrot.lane.b32.xlu1 %v2474_v6, %s2510_s10 }
0x20a8   :  { %v1420_v21 = vpop.permute.xlu1 %1419 }
0x20a9   :  { %v1422_v8 = vmul.f32 %v2472_v14, %v1420_v21 }
0x20ab   :  { %v1424_v22 = vrot.slane %v1422_v8, 6 }
0x20ad   :  { %1425 = vrot.lane.b32.xlu0 %v1424_v22, %s2511_s11 }
0x211f   :  { %v1426_v24 = vpop.permute.xlu0 %1425 }
0x2120   :  { %2218 = vmatmul.mubr.msk.f32.vlgmr.msra.gmra.mrb[12].mxu1 %vm34_vm2, %v1426_v24 }
0x2121   :  { %2358 = vmatpush3.bf16.msra.mxu1 %v2717_v49  ;;  %2239 = vmatprep.mubr.msk.f32.mxu1 %vm2508_vm0, %v2509_v4 }
0x2122   :  { %2359 = vmatprep.subr.bf16.mxu1 %v2507_v0 }
0x2125   :  { %2361 = vmatpush3.bf16.msra.mxu1 %v2729_v53 }
0x2126   :  { %2368 = vmatprep.subr.bf16.mxu1 %v2507_v0 }
0x21f3   :  { %v1495_v25 = vpop.f32.mrb[12].mxu1 }
0x21f4   :  { %v1499_v27 = vadd.f32 %v1495_v25, %v2757_v2  ;;  %v2219_v28 = vpop.f32.mrb[13].mxu1 }
0x21f6   :  { %2475 = vtanh.f32 %v1499_v27  ;;  %v1966_v30 = vmul.f32 -1.442695, %v1499_v27 }
0x21f8   :  { %2477 = vpow2.f32 %v1966_v30 }
0x2200   :  { %v2476_v29 = vpop.eup %2475 }
0x2201   :  { %1512 = vrot.lane.b32.xlu1 %v2476_v29, %s2510_s10 }
0x2202   :  { %v2478_v31 = vpop.eup %2477 }
0x2203   :  { %v1503_v32 = vadd.f32 1.0, %v2478_v31 }
0x2205   :  { %2479 = vrcp.f32 %v1503_v32 }
0x220f   :  { %v2480_v33 = vpop.eup %2479 }
0x2210   :  { %v1510_v37 = vmul.f32 %v2480_v33, %v1508_v36 }
0x2273   :  { %v1513_v34 = vpop.permute.xlu1 %1512 }
0x2274   :  { %v1515_v35 = vmul.f32 %v2480_v33, %v1513_v34 }
0x2276   :  { %1517 = vrot.lane.b32.xlu0 %v1515_v35, %s2511_s11 }
0x22e8   :  { %v1518_v26 = vpop.permute.xlu0 %1517 }
0x22e9   :  { %v1520_v38 = vadd.f32 %v1518_v26, %v1510_v37  ;;  %v1848_v37 = vld [vmem:[%s2864_s5 + $0x8] sm:$0xff]  ;;  %v1849_v26 = vld [vmem:[%s2864_s5 + $0x10] sm:$0xff] }
0x22eb   :  { %2481 = vtanh.f32 %v1520_v38 }
0x22f5   :  { %v2482_v39 = vpop.eup %2481 }
0x22f6   :  { %1523 = vrot.lane.b32.xlu1 %v2482_v39, %s2510_s10  ;;  %v1850_v39 = vld [vmem:[%s2864_s5 + $0x18] sm:$0xff] }
0x2368   :  { %v1524_v40 = vpop.permute.xlu1 %1523 }
0x2369   :  { %v1526_v41 = vmul.f32 %v2480_v33, %v1524_v40  ;;  %v2372_v40 = vpack.c.bf16 %v1850_v39, %v1849_v26 }
0x236b   :  { %1528 = vrot.lane.b32.xlu0 %v1526_v41, %s2511_s11 }
0x23dd   :  { %v1529_v42 = vpop.permute.xlu0 %1528 }
0x23de   :  { %2229 = vmatmul.mubr.msk.f32.vlgmr.msra.gmra.mrb[14].mxu0 %vm34_vm2, %v1529_v42  ;;  %v12_v42 = vstv %s2865_s6 }
0x23df   :  { %2364 = vmatpush3.bf16.msra.mxu0 %v2717_v49  ;;  %2250 = vmatprep.mubr.msk.f32.mxu0 %vm2508_vm0, %v2509_v4  ;;  %13 = vst [vmem:[#allocation3] sm:$0x1] %v12_v42 }
0x23e0   :  { %2365 = vmatprep.subr.bf16.mxu0 %v2507_v0 }
0x23e3   :  { %2367 = vmatpush3.bf16.msra.mxu0 %v2729_v53  ;;  %v1614_v53 = vrot.slane %v1520_v38, 6 }
0x24b1   :  { %v1598_v43 = vpop.f32.mrb[14].mxu0 }
0x24b2   :  { %v1603_v44 = vrot.slane %v1598_v43, 6  ;;  %v2230_v23 = vpop.f32.mrb[15].mxu0 }
0x24b4   :  { %v1605_v45 = vadd.f32 %v1603_v44, %v2757_v2 }
0x24b6   :  { %2483 = vtanh.f32 %v1605_v45  ;;  %v1968_v47 = vmul.f32 -1.442695, %v1605_v45 }
0x24b8   :  { %2485 = vpow2.f32 %v1968_v47 }
0x24c0   :  { %v2484_v46 = vpop.eup %2483 }
0x24c1   :  { %1618 = vrot.lane.b32.xlu1 %v2484_v46, %s2510_s10  ;;  %v1973_v46 = vld [vmem:[#allocation3] ss:$0 sm:$0xff] }
0x24c2   :  { %v2486_v63 = vpop.eup %2485 }
0x24c3   :  { %v1609_v49 = vadd.f32 1.0, %v2486_v63 }
0x24c5   :  { %2487 = vrcp.f32 %v1609_v49 }
0x24cf   :  { %v2488_v48 = vpop.eup %2487 }
0x24d0   :  { %v1616_v5 = vmul.f32 %v2488_v48, %v1614_v53 }
0x2533   :  { %v1619_v50 = vpop.permute.xlu1 %1618 }
0x2534   :  { %v1621_v51 = vmul.f32 %v2488_v48, %v1619_v50 }
0x2536   :  { %1623 = vrot.lane.b32.xlu0 %v1621_v51, %s2511_s11 }
0x25a8   :  { %v1624_v52 = vpop.permute.xlu0 %1623 }
0x25a9   :  { %v1626_v54 = vadd.f32 %v1624_v52, %v1616_v5 }
0x25ab   :  { %2489 = vtanh.f32 %v1626_v54 }
0x25b5   :  { %v2490_v55 = vpop.eup %2489 }
0x25b6   :  { %1629 = vrot.lane.b32.xlu1 %v2490_v55, %s2510_s10 }
0x2628   :  { %v1630_v7 = vpop.permute.xlu1 %1629 }
0x2629   :  { %v1632_v56 = vmul.f32 %v2488_v48, %v1630_v7 }
0x262b   :  { %v1634_v57 = vrot.slane %v1632_v56, 2 }
0x262d   :  { %1635 = vrot.lane.b32.xlu0 %v1634_v57, %s2511_s11 }
0x269f   :  { %v1636_v58 = vpop.permute.xlu0 %1635 }
0x26a0   :  { %2240 = vmatmul.mubr.msk.f32.vlgmr.msra.gmra.mrb[14].mxu1 %vm34_vm2, %v1636_v58 }
0x26a1   :  { %2261 = vmatprep.mubr.msk.f32.mxu1 %vm2508_vm0, %v2509_v4  ;;  %v1721_v4 = vrot.slane %v1626_v54, 6 }
0x2773   :  { %v1705_v59 = vpop.f32.mrb[14].mxu1 }
0x2774   :  { %v1710_v60 = vrot.slane %v1705_v59, 4  ;;  %v2241_v61 = vpop.f32.mrb[15].mxu1 }
0x2776   :  { %v1712_v62 = vadd.f32 %v1710_v60, %v2757_v2 }
0x2778   :  { %2491 = vtanh.f32 %v1712_v62  ;;  %v1970_v3 = vmul.f32 -1.442695, %v1712_v62 }
0x277a   :  { %2493 = vpow2.f32 %v1970_v3 }
0x2782   :  { %v2492_v1 = vpop.eup %2491 }
0x2783   :  { %1725 = vrot.lane.b32.xlu1 %v2492_v1, %s2510_s10 }
0x2784   :  { %v2494_v9 = vpop.eup %2493 }
0x2785   :  { %v1716_v10 = vadd.f32 1.0, %v2494_v9 }
0x2787   :  { %2495 = vrcp.f32 %v1716_v10 }
0x2791   :  { %v2496_v11 = vpop.eup %2495 }
0x2792   :  { %v1723_v14 = vmul.f32 %v2496_v11, %v1721_v4 }
0x27f5   :  { %v1726_v12 = vpop.permute.xlu1 %1725 }
0x27f6   :  { %v1728_v13 = vmul.f32 %v2496_v11, %v1726_v12 }
0x27f8   :  { %1730 = vrot.lane.b32.xlu0 %v1728_v13, %s2511_s11 }
0x286a   :  { %v1731_v15 = vpop.permute.xlu0 %1730 }
0x286b   :  { %v1733_v16 = vadd.f32 %v1731_v15, %v1723_v14 }
0x286d   :  { %2497 = vtanh.f32 %v1733_v16  ;;  %v1828_v33 = vrot.slane %v1733_v16, 6 }
0x2877   :  { %v2498_v17 = vpop.eup %2497 }
0x2878   :  { %1736 = vrot.lane.b32.xlu1 %v2498_v17, %s2510_s10 }
0x28ea   :  { %v1737_v18 = vpop.permute.xlu1 %1736 }
0x28eb   :  { %v1739_v19 = vmul.f32 %v2496_v11, %v1737_v18 }
0x28ed   :  { %v1741_v20 = vrot.slane %v1739_v19, 4 }
0x28ef   :  { %1742 = vrot.lane.b32.xlu0 %v1741_v20, %s2511_s11 }
0x2961   :  { %v1743_v6 = vpop.permute.xlu0 %1742 }
0x2962   :  { %2251 = vmatmul.mubr.msk.f32.vlgmr.msra.gmra.mrb[16].mxu0 %vm34_vm2, %v1743_v6 }
0x2a35   :  { %v1812_v21 = vpop.f32.mrb[16].mxu0 }
0x2a36   :  { %v1817_v8 = vrot.slane %v1812_v21, 2  ;;  %v2252_v22 = vpop.f32.mrb[17].mxu0 }
0x2a38   :  { %v1819_v24 = vadd.f32 %v1817_v8, %v2757_v2  ;;  %v1847_v2 = vld [vmem:[%s2864_s5] sm:$0xff] }
0x2a39   :  { %v2369_v38 = vpack.c.bf16 %v1848_v37, %v1847_v2 }
0x2a3a   :  { %2499 = vtanh.f32 %v1819_v24  ;;  %v1972_v27 = vmul.f32 -1.442695, %v1819_v24 }
0x2a3b   :  { %2370 = vmatpush3.bf16.msra.mxu1 %v2369_v38 }
0x2a3c   :  { %2501 = vpow2.f32 %v1972_v27  ;;  %2371 = vmatprep.subr.bf16.mxu1 %v2507_v0 }
0x2a3f   :  { %2373 = vmatpush3.bf16.msra.mxu1 %v2372_v40 }
0x2a44   :  { %v2500_v25 = vpop.eup %2499 }
0x2a45   :  { %1832 = vrot.lane.b32.xlu1 %v2500_v25, %s2510_s10 }
0x2a46   :  { %v2502_v28 = vpop.eup %2501 }
0x2a47   :  { %v1823_v29 = vadd.f32 1.0, %v2502_v28 }
0x2a49   :  { %2503 = vrcp.f32 %v1823_v29 }
0x2a53   :  { %v2504_v30 = vpop.eup %2503 }
0x2a54   :  { %v1830_v34 = vmul.f32 %v2504_v30, %v1828_v33 }
0x2ab7   :  { %v1833_v31 = vpop.permute.xlu1 %1832 }
0x2ab8   :  { %v1835_v32 = vmul.f32 %v2504_v30, %v1833_v31 }
0x2aba   :  { %1837 = vrot.lane.b32.xlu0 %v1835_v32, %s2511_s11 }
0x2b2c   :  { %v1838_v35 = vpop.permute.xlu0 %1837 }
0x2b2d   :  { %v1840_v36 = vadd.f32 %v1838_v35, %v1830_v34 }
0x2b2f   :  { %2505 = vtanh.f32 %v1840_v36 }
0x2b39   :  { %v2506_v41 = vpop.eup %2505 }
0x2b3a   :  { %1843 = vrot.lane.b32.xlu1 %v2506_v41, %s2510_s10 }
0x2bac   :  { %v1844_v43 = vpop.permute.xlu1 %1843 }
0x2bad   :  { %v1846_v44 = vmul.f32 %v2504_v30, %v1844_v43 }
0x2baf   :  { %v1859_v23 = vrot.slane %v1846_v44, 6 }
0x2bb1   :  { %1860 = vrot.lane.b32.xlu0 %v1859_v23, %s2511_s11 }
0x2c23   :  { %v1861_v45 = vpop.permute.xlu0 %1860 }
0x2c24   :  { %2262 = vmatmul.mubr.msk.f32.vlgmr.msra.gmra.mrb[16].mxu1 %vm34_vm2, %v1861_v45 }
0x2cf7   :  { %v1930_v47 = vpop.f32.mrb[16].mxu1 }
0x2cf8   :  { %v1931_v0 = vadd.f32 %v1973_v46, %v1930_v47  ;;  %v2263_v63 = vpop.f32.mrb[17].mxu1 }
0x2cfa   :  { %1935 = vst.msk [vmem:[%s2866_s7] sm:$0x3] %vm1934_vm6, %v1931_v0 }

</bundles_post_ra>
